<compile_context>
chip_gen: v6e
topology: v6e:2x2x1
jax: 0.10.0
libtpu: 0.0.40
codegen_flags: <defaults>
</compile_context>

<pallas_src>
import jax
import jax.numpy as jnp
from jax.experimental import pallas as pl
from jax.experimental.pallas import tpu as pltpu


def _round_up(n, m):
    return ((n + m - 1) // m) * m


def make_task_embedder_kernel(T, Bp, HP, OP, unroll):
    """Build the kernel closed over static shape parameters."""
    H3 = 3 * HP

    def kernel(x_ref, wi_ref, bi_ref, wh_ref, bhn_ref, wfc_ref, bfc_ref,
               out_ref, gi_ref):
        # ---- Prologue: every input-side projection in one MXU pass. -------
        # gi[t*Bp + b, g*HP : g*HP+H] = x[t, b] @ W_i{g}^T + folded biases.
        # Written to VMEM scratch so the recurrence only keeps h live.
        gi_ref[...] = (
            jnp.dot(x_ref[...], wi_ref[...],
                    preferred_element_type=jnp.float32)
            + bi_ref[...])                                   # (T*Bp, 3*HP)

        # Hidden-side fused gate matrix (bf16): single load, reused all steps.
        wh = wh_ref[...]                                     # (HP, 3*HP) bf16
        # Hoisted broadcast of the only bias left inside the loop (b_hn).
        bhn = jnp.broadcast_to(bhn_ref[...], (Bp, H3))       # (Bp, 3*HP) f32

        # ---- Recurrence: fori_loop, h carried as a value. ------------------
        def step(t, h):
            row0 = pl.multiple_of(t * Bp, Bp)        # sublane-aligned start
            gi_t = gi_ref[pl.ds(row0, Bp), :]        # (Bp, 3*HP), f32
            # bf16 operands on the serial h -> h critical path; f32 acc.
            gh = jnp.dot(h.astype(wh.dtype), wh,
                         preferred_element_type=jnp.float32) + bhn
            r = jax.nn.sigmoid(gi_t[:, 0:HP] + gh[:, 0:HP])
            z = jax.nn.sigmoid(gi_t[:, HP:2 * HP] + gh[:, HP:2 * HP])
            n = jnp.tanh(gi_t[:, 2 * HP:H3] + r * gh[:, 2 * HP:H3])
            return (1.0 - z) * n + z * h

        h0 = jnp.zeros((Bp, HP), jnp.float32)
        h = jax.lax.fori_loop(0, T, step, h0, unroll=min(unroll, T))

        # ---- Fused fc on the final hidden state (f32, lane-dense store). --
        out_ref[...] = (
            jnp.dot(h, wfc_ref[...], preferred_element_type=jnp.float32)
            + bfc_ref[...]).astype(out_ref.dtype)

    return kernel


def pack_task_embedder_params(w_ih, w_hh, b_ih, b_hh, w_fc, b_fc):
    """One-time repacking of the PyTorch GRU + Linear parameters.

    Do this at parameter-load time; per-forward-call cost is then just the
    transpose/pad of x and the kernel itself.
    """
    H = w_hh.shape[1]
    O = w_fc.shape[0]
    HP = _round_up(H, 128)          # lane-align each gate's slot
    OP = _round_up(O, 128)          # lane-dense output
    pad_c = HP - H
    f32 = jnp.float32

    # Split the PyTorch 3H-stacked GRU weights (gate order r, z, n).
    w_ir, w_iz, w_in_ = jnp.split(w_ih.astype(f32), 3, axis=0)   # (H, D) each
    w_hr, w_hz, w_hn = jnp.split(w_hh.astype(f32), 3, axis=0)    # (H, H) each
    b_ir, b_iz, b_in_ = jnp.split(b_ih.astype(f32), 3)
    b_hr, b_hz, b_hn = jnp.split(b_hh.astype(f32), 3)

    def gate_cols(w):               # (rows, H) -> (rows, HP), zero lane pad
        return jnp.pad(w, ((0, 0), (0, pad_c)))

    def gate_vec(v):
        return jnp.pad(v, (0, pad_c))

    # Input-side weights, x @ W form: (D, 3*HP), kept f32 (one-shot prologue).
    wi = jnp.concatenate(
        [gate_cols(w_ir.T), gate_cols(w_iz.T), gate_cols(w_in_.T)], axis=1)
    # Hidden-side weights fused into one (HP, 3*HP) matrix, bf16 (per-step).
    wh = jnp.concatenate(
        [jnp.pad(w.T, ((0, pad_c), (0, pad_c))) for w in (w_hr, w_hz, w_hn)],
        axis=1).astype(jnp.bfloat16)
    # r/z biases (input+hidden) and the input-side n bias fold into the
    # prologue projection; only b_hn survives inside the recurrence.
    bi = jnp.concatenate(
        [gate_vec(b_ir + b_hr), gate_vec(b_iz + b_hz), gate_vec(b_in_)]
    ).reshape(1, 3 * HP)
    bhn = jnp.concatenate(
        [jnp.zeros((2 * HP,), f32), gate_vec(b_hn)]).reshape(1, 3 * HP)
    # fc weights padded to (HP, OP); padded rows/cols are zero so padded
    # hidden lanes / padded output lanes contribute nothing.
    wfc = jnp.pad(w_fc.astype(f32).T, ((0, pad_c), (0, OP - O)))
    bfc = jnp.pad(b_fc.astype(f32), (0, OP - O)).reshape(1, OP)

    return dict(wi=wi, bi=bi, wh=wh, bhn=bhn, wfc=wfc, bfc=bfc,
                hidden_dim=H, output_dim=O, HP=HP, OP=OP)


def make_task_embedder_forward(params, *, unroll=8):
    """Returns a jitted forward(x: (B, T, D)) -> (B, output_dim)."""
    wi, bi, wh = params["wi"], params["bi"], params["wh"]
    bhn, wfc, bfc = params["bhn"], params["wfc"], params["bfc"]
    HP, OP, O = params["HP"], params["OP"], params["output_dim"]

    @jax.jit
    def forward(x):
        B, T, D = x.shape
        Bp = _round_up(max(B, 1), 8)        # sublane-align the batch rows
        # Time-major, batch padded so step t owns rows [t*Bp, (t+1)*Bp).
        x_tm = jnp.transpose(x.astype(jnp.float32), (1, 0, 2))
        x_tm = jnp.pad(x_tm, ((0, 0), (0, Bp - B), (0, 0)))
        x_tm = x_tm.reshape(T * Bp, D)

        kernel = make_task_embedder_kernel(T, Bp, HP, OP, unroll)
        # Single invocation, no grid: every operand is tiny and fully
        # VMEM-resident on every generation (well under v7x's 64 MiB), so
        # there are no per-step DMAs at all.
        # TODO(synk): if the call site evaluates many independent sequences,
        # add a leading grid axis over them with
        # dimension_semantics=("parallel",) to shard across v7x's 2 TCs.
        out = pl.pallas_call(
            kernel,
            out_shape=jax.ShapeDtypeStruct((Bp, OP), jnp.float32),
            scratch_shapes=[pltpu.VMEM((T * Bp, 3 * HP), jnp.float32)],
        )(x_tm, wi, bi, wh, bhn, wfc, bfc)
        return out[:B, :O]

    return forward


def task_embedder_ref(x, w_ih, w_hh, b_ih, b_hh, w_fc, b_fc):
    """Pure-JAX reference matching torch.nn.GRU (1 layer) + Linear."""
    B, T, D = x.shape
    H = w_hh.shape[1]

    def step(h, x_t):
        gi = x_t @ w_ih.T + b_ih
        gh = h @ w_hh.T + b_hh
        i_r, i_z, i_n = jnp.split(gi, 3, axis=-1)
        h_r, h_z, h_n = jnp.split(gh, 3, axis=-1)
        r = jax.nn.sigmoid(i_r + h_r)
        z = jax.nn.sigmoid(i_z + h_z)
        n = jnp.tanh(i_n + r * h_n)
        return (1.0 - z) * n + z * h, None

    h0 = jnp.zeros((B, H), jnp.float32)
    h_final, _ = jax.lax.scan(step, h0, jnp.transpose(x, (1, 0, 2)))
    return h_final @ w_fc.T + b_fc


if __name__ == "__main__":
    # Small shapes consistent with TaskEmbedder(input_dim, hidden_dim, output_dim)
    B, T, D, H, O = 2, 8, 16, 32, 8

    key = jax.random.PRNGKey(0)
    ks = jax.random.split(key, 7)
    bound = 1.0 / jnp.sqrt(H)  # PyTorch default GRU/Linear init range
    w_ih = jax.random.uniform(ks[0], (3 * H, D), jnp.float32, -bound, bound)
    w_hh = jax.random.uniform(ks[1], (3 * H, H), jnp.float32, -bound, bound)
    b_ih = jax.random.uniform(ks[2], (3 * H,), jnp.float32, -bound, bound)
    b_hh = jax.random.uniform(ks[3], (3 * H,), jnp.float32, -bound, bound)
    w_fc = jax.random.uniform(ks[4], (O, H), jnp.float32, -bound, bound)
    b_fc = jax.random.uniform(ks[5], (O,), jnp.float32, -bound, bound)
    x = jax.random.normal(ks[6], (B, T, D), jnp.float32)

    params = pack_task_embedder_params(w_ih, w_hh, b_ih, b_hh, w_fc, b_fc)
    forward = make_task_embedder_forward(params)

    out = jax.block_until_ready(forward(x))
    ref = task_embedder_ref(x, w_ih, w_hh, b_ih, b_hh, w_fc, b_fc)

    assert out.shape == (B, O), out.shape
    # bf16 MXU operands on the hidden-state recurrence -> relaxed tolerance.
    max_diff = float(jnp.max(jnp.abs(out - ref)))
    assert jnp.allclose(out, ref, atol=2e-2, rtol=2e-2), (
        f"max abs diff {max_diff}")

    print("KERNEL_OK")
</pallas_src>

<mosaic_0001>
module attributes {stable_mosaic.version = 11 : i64} {
  func.func @kernel(%arg0: memref<64x16xf32, #tpu.memory_space<vmem>>, %arg1: memref<16x384xf32, #tpu.memory_space<vmem>>, %arg2: memref<1x384xf32, #tpu.memory_space<vmem>>, %arg3: memref<128x384xbf16, #tpu.memory_space<vmem>>, %arg4: memref<1x384xf32, #tpu.memory_space<vmem>>, %arg5: memref<128x128xf32, #tpu.memory_space<vmem>>, %arg6: memref<1x128xf32, #tpu.memory_space<vmem>>, %arg7: memref<8x128xf32, #tpu.memory_space<vmem>>, %arg8: memref<64x384xf32, #tpu.memory_space<vmem>>) attributes {dimension_semantics = [], scalar_prefetch = 0 : i64, scratch_operands = 1 : i64, tpu.core_type = #tpu.core_type<tc>} {
    %c0 = arith.constant 0 : index
    %c0_0 = arith.constant 0 : index
    %0 = vector.load %arg0[%c0, %c0_0] : memref<64x16xf32, #tpu.memory_space<vmem>>, vector<64x16xf32>
    %c0_1 = arith.constant 0 : index
    %c0_2 = arith.constant 0 : index
    %1 = vector.load %arg1[%c0_1, %c0_2] : memref<16x384xf32, #tpu.memory_space<vmem>>, vector<16x384xf32>
    %cst = arith.constant dense<0.000000e+00> : vector<64x384xf32>
    %2 = tpu.matmul %0, %1, %cst {dimension_numbers = #tpu.dot_dimension_numbers<[1], [0], [0], [1], [0, 0, 1, 1], [], []>} : vector<64x16xf32>, vector<16x384xf32>, vector<64x384xf32> -> vector<64x384xf32>
    %c0_3 = arith.constant 0 : index
    %c0_4 = arith.constant 0 : index
    %3 = vector.load %arg2[%c0_3, %c0_4] : memref<1x384xf32, #tpu.memory_space<vmem>>, vector<1x384xf32>
    %4 = vector.broadcast %3 : vector<1x384xf32> to vector<64x384xf32>
    %5 = arith.addf %2, %4 : vector<64x384xf32>
    %c0_5 = arith.constant 0 : index
    %c0_6 = arith.constant 0 : index
    %6 = vector.load %arg8[%c0_5, %c0_6] : memref<64x384xf32, #tpu.memory_space<vmem>>, vector<64x384xf32>
    tpu.vector_store %arg8[%c0_5, %c0_6], %5 {strides = array<i32>} : memref<64x384xf32, #tpu.memory_space<vmem>>, vector<64x384xf32>,
    %c0_7 = arith.constant 0 : index
    %c0_8 = arith.constant 0 : index
    %7 = vector.load %arg3[%c0_7, %c0_8] : memref<128x384xbf16, #tpu.memory_space<vmem>>, vector<128x384xbf16>
    %c0_9 = arith.constant 0 : index
    %c0_10 = arith.constant 0 : index
    %8 = vector.load %arg4[%c0_9, %c0_10] : memref<1x384xf32, #tpu.memory_space<vmem>>, vector<1x384xf32>
    %9 = vector.shape_cast %8 : vector<1x384xf32> to vector<1x384xf32>
    %10 = vector.broadcast %9 : vector<1x384xf32> to vector<8x384xf32>
    %cst_11 = arith.constant 0.000000e+00 : f32
    %11 = vector.broadcast %cst_11 : f32 to vector<8x128xf32>
    %c0_i32 = arith.constant 0 : i32
    %c8_i32 = arith.constant 8 : i32
    %12 = arith.muli %c0_i32, %c8_i32 : i32
    %13 = tpu.assume_multiple %12, 8 : i32
    %14 = arith.index_cast %13 : i32 to index
    %c0_12 = arith.constant 0 : index
    %15 = vector.load %arg8[%14, %c0_12] : memref<64x384xf32, #tpu.memory_space<vmem>>, vector<8x384xf32>
    %16 = arith.truncf %11 : vector<8x128xf32> to vector<8x128xbf16>
    %cst_13 = arith.constant dense<0.000000e+00> : vector<8x384xf32>
    %17 = tpu.matmul %16, %7, %cst_13 {dimension_numbers = #tpu.dot_dimension_numbers<[1], [0], [0], [1], [0, 0, 1, 1], [], []>} : vector<8x128xbf16>, vector<128x384xbf16>, vector<8x384xf32> -> vector<8x384xf32>
    %18 = arith.addf %17, %10 : vector<8x384xf32>
    %19 = vector.extract_strided_slice %15 {offsets = [0, 0], sizes = [8, 128], strides = [1, 1]} : vector<8x384xf32> to vector<8x128xf32>
    %20 = vector.extract_strided_slice %18 {offsets = [0, 0], sizes = [8, 128], strides = [1, 1]} : vector<8x384xf32> to vector<8x128xf32>
    %21 = arith.addf %19, %20 : vector<8x128xf32>
    %22 = arith.negf %21 : vector<8x128xf32>
    %23 = math.exp %22 : vector<8x128xf32>
    %cst_14 = arith.constant 1.000000e+00 : f32
    %24 = vector.broadcast %cst_14 : f32 to vector<8x128xf32>
    %25 = arith.addf %24, %23 : vector<8x128xf32>
    %26 = arith.divf %24, %25 : vector<8x128xf32>
    %27 = vector.extract_strided_slice %15 {offsets = [0, 128], sizes = [8, 128], strides = [1, 1]} : vector<8x384xf32> to vector<8x128xf32>
    %28 = vector.extract_strided_slice %18 {offsets = [0, 128], sizes = [8, 128], strides = [1, 1]} : vector<8x384xf32> to vector<8x128xf32>
    %29 = arith.addf %27, %28 : vector<8x128xf32>
    %30 = arith.negf %29 : vector<8x128xf32>
    %31 = math.exp %30 : vector<8x128xf32>
    %cst_15 = arith.constant 1.000000e+00 : f32
    %32 = vector.broadcast %cst_15 : f32 to vector<8x128xf32>
    %33 = arith.addf %32, %31 : vector<8x128xf32>
    %34 = arith.divf %32, %33 : vector<8x128xf32>
    %35 = vector.extract_strided_slice %15 {offsets = [0, 256], sizes = [8, 128], strides = [1, 1]} : vector<8x384xf32> to vector<8x128xf32>
    %36 = vector.extract_strided_slice %18 {offsets = [0, 256], sizes = [8, 128], strides = [1, 1]} : vector<8x384xf32> to vector<8x128xf32>
    %37 = arith.mulf %26, %36 : vector<8x128xf32>
    %38 = arith.addf %35, %37 : vector<8x128xf32>
    %39 = math.tanh %38 : vector<8x128xf32>
    %cst_16 = arith.constant 1.000000e+00 : f32
    %40 = vector.broadcast %cst_16 : f32 to vector<8x128xf32>
    %41 = arith.subf %40, %34 : vector<8x128xf32>
    %42 = arith.mulf %41, %39 : vector<8x128xf32>
    %43 = arith.mulf %34, %11 : vector<8x128xf32>
    %44 = arith.addf %42, %43 : vector<8x128xf32>
    %c1_i32 = arith.constant 1 : i32
    %c8_i32_17 = arith.constant 8 : i32
    %45 = arith.muli %c1_i32, %c8_i32_17 : i32
    %46 = tpu.assume_multiple %45, 8 : i32
    %47 = arith.index_cast %46 : i32 to index
    %c0_18 = arith.constant 0 : index
    %48 = vector.load %arg8[%47, %c0_18] : memref<64x384xf32, #tpu.memory_space<vmem>>, vector<8x384xf32>
    %49 = arith.truncf %44 : vector<8x128xf32> to vector<8x128xbf16>
    %cst_19 = arith.constant dense<0.000000e+00> : vector<8x384xf32>
    %50 = tpu.matmul %49, %7, %cst_19 {dimension_numbers = #tpu.dot_dimension_numbers<[1], [0], [0], [1], [0, 0, 1, 1], [], []>} : vector<8x128xbf16>, vector<128x384xbf16>, vector<8x384xf32> -> vector<8x384xf32>
    %51 = arith.addf %50, %10 : vector<8x384xf32>
    %52 = vector.extract_strided_slice %48 {offsets = [0, 0], sizes = [8, 128], strides = [1, 1]} : vector<8x384xf32> to vector<8x128xf32>
    %53 = vector.extract_strided_slice %51 {offsets = [0, 0], sizes = [8, 128], strides = [1, 1]} : vector<8x384xf32> to vector<8x128xf32>
    %54 = arith.addf %52, %53 : vector<8x128xf32>
    %55 = arith.negf %54 : vector<8x128xf32>
    %56 = math.exp %55 : vector<8x128xf32>
    %cst_20 = arith.constant 1.000000e+00 : f32
    %57 = vector.broadcast %cst_20 : f32 to vector<8x128xf32>
    %58 = arith.addf %57, %56 : vector<8x128xf32>
    %59 = arith.divf %57, %58 : vector<8x128xf32>
    %60 = vector.extract_strided_slice %48 {offsets = [0, 128], sizes = [8, 128], strides = [1, 1]} : vector<8x384xf32> to vector<8x128xf32>
    %61 = vector.extract_strided_slice %51 {offsets = [0, 128], sizes = [8, 128], strides = [1, 1]} : vector<8x384xf32> to vector<8x128xf32>
    %62 = arith.addf %60, %61 : vector<8x128xf32>
    %63 = arith.negf %62 : vector<8x128xf32>
    %64 = math.exp %63 : vector<8x128xf32>
    %cst_21 = arith.constant 1.000000e+00 : f32
    %65 = vector.broadcast %cst_21 : f32 to vector<8x128xf32>
    %66 = arith.addf %65, %64 : vector<8x128xf32>
    %67 = arith.divf %65, %66 : vector<8x128xf32>
    %68 = vector.extract_strided_slice %48 {offsets = [0, 256], sizes = [8, 128], strides = [1, 1]} : vector<8x384xf32> to vector<8x128xf32>
    %69 = vector.extract_strided_slice %51 {offsets = [0, 256], sizes = [8, 128], strides = [1, 1]} : vector<8x384xf32> to vector<8x128xf32>
    %70 = arith.mulf %59, %69 : vector<8x128xf32>
    %71 = arith.addf %68, %70 : vector<8x128xf32>
    %72 = math.tanh %71 : vector<8x128xf32>
    %cst_22 = arith.constant 1.000000e+00 : f32
    %73 = vector.broadcast %cst_22 : f32 to vector<8x128xf32>
    %74 = arith.subf %73, %67 : vector<8x128xf32>
    %75 = arith.mulf %74, %72 : vector<8x128xf32>
    %76 = arith.mulf %67, %44 : vector<8x128xf32>
    %77 = arith.addf %75, %76 : vector<8x128xf32>
    %c2_i32 = arith.constant 2 : i32
    %c8_i32_23 = arith.constant 8 : i32
    %78 = arith.muli %c2_i32, %c8_i32_23 : i32
    %79 = tpu.assume_multiple %78, 8 : i32
    %80 = arith.index_cast %79 : i32 to index
    %c0_24 = arith.constant 0 : index
    %81 = vector.load %arg8[%80, %c0_24] : memref<64x384xf32, #tpu.memory_space<vmem>>, vector<8x384xf32>
    %82 = arith.truncf %77 : vector<8x128xf32> to vector<8x128xbf16>
    %cst_25 = arith.constant dense<0.000000e+00> : vector<8x384xf32>
    %83 = tpu.matmul %82, %7, %cst_25 {dimension_numbers = #tpu.dot_dimension_numbers<[1], [0], [0], [1], [0, 0, 1, 1], [], []>} : vector<8x128xbf16>, vector<128x384xbf16>, vector<8x384xf32> -> vector<8x384xf32>
    %84 = arith.addf %83, %10 : vector<8x384xf32>
    %85 = vector.extract_strided_slice %81 {offsets = [0, 0], sizes = [8, 128], strides = [1, 1]} : vector<8x384xf32> to vector<8x128xf32>
    %86 = vector.extract_strided_slice %84 {offsets = [0, 0], sizes = [8, 128], strides = [1, 1]} : vector<8x384xf32> to vector<8x128xf32>
    %87 = arith.addf %85, %86 : vector<8x128xf32>
    %88 = arith.negf %87 : vector<8x128xf32>
    %89 = math.exp %88 : vector<8x128xf32>
    %cst_26 = arith.constant 1.000000e+00 : f32
    %90 = vector.broadcast %cst_26 : f32 to vector<8x128xf32>
    %91 = arith.addf %90, %89 : vector<8x128xf32>
    %92 = arith.divf %90, %91 : vector<8x128xf32>
    %93 = vector.extract_strided_slice %81 {offsets = [0, 128], sizes = [8, 128], strides = [1, 1]} : vector<8x384xf32> to vector<8x128xf32>
    %94 = vector.extract_strided_slice %84 {offsets = [0, 128], sizes = [8, 128], strides = [1, 1]} : vector<8x384xf32> to vector<8x128xf32>
    %95 = arith.addf %93, %94 : vector<8x128xf32>
    %96 = arith.negf %95 : vector<8x128xf32>
    %97 = math.exp %96 : vector<8x128xf32>
    %cst_27 = arith.constant 1.000000e+00 : f32
    %98 = vector.broadcast %cst_27 : f32 to vector<8x128xf32>
    %99 = arith.addf %98, %97 : vector<8x128xf32>
    %100 = arith.divf %98, %99 : vector<8x128xf32>
    %101 = vector.extract_strided_slice %81 {offsets = [0, 256], sizes = [8, 128], strides = [1, 1]} : vector<8x384xf32> to vector<8x128xf32>
    %102 = vector.extract_strided_slice %84 {offsets = [0, 256], sizes = [8, 128], strides = [1, 1]} : vector<8x384xf32> to vector<8x128xf32>
    %103 = arith.mulf %92, %102 : vector<8x128xf32>
    %104 = arith.addf %101, %103 : vector<8x128xf32>
    %105 = math.tanh %104 : vector<8x128xf32>
    %cst_28 = arith.constant 1.000000e+00 : f32
    %106 = vector.broadcast %cst_28 : f32 to vector<8x128xf32>
    %107 = arith.subf %106, %100 : vector<8x128xf32>
    %108 = arith.mulf %107, %105 : vector<8x128xf32>
    %109 = arith.mulf %100, %77 : vector<8x128xf32>
    %110 = arith.addf %108, %109 : vector<8x128xf32>
    %c3_i32 = arith.constant 3 : i32
    %c8_i32_29 = arith.constant 8 : i32
    %111 = arith.muli %c3_i32, %c8_i32_29 : i32
    %112 = tpu.assume_multiple %111, 8 : i32
    %113 = arith.index_cast %112 : i32 to index
    %c0_30 = arith.constant 0 : index
    %114 = vector.load %arg8[%113, %c0_30] : memref<64x384xf32, #tpu.memory_space<vmem>>, vector<8x384xf32>
    %115 = arith.truncf %110 : vector<8x128xf32> to vector<8x128xbf16>
    %cst_31 = arith.constant dense<0.000000e+00> : vector<8x384xf32>
    %116 = tpu.matmul %115, %7, %cst_31 {dimension_numbers = #tpu.dot_dimension_numbers<[1], [0], [0], [1], [0, 0, 1, 1], [], []>} : vector<8x128xbf16>, vector<128x384xbf16>, vector<8x384xf32> -> vector<8x384xf32>
    %117 = arith.addf %116, %10 : vector<8x384xf32>
    %118 = vector.extract_strided_slice %114 {offsets = [0, 0], sizes = [8, 128], strides = [1, 1]} : vector<8x384xf32> to vector<8x128xf32>
    %119 = vector.extract_strided_slice %117 {offsets = [0, 0], sizes = [8, 128], strides = [1, 1]} : vector<8x384xf32> to vector<8x128xf32>
    %120 = arith.addf %118, %119 : vector<8x128xf32>
    %121 = arith.negf %120 : vector<8x128xf32>
    %122 = math.exp %121 : vector<8x128xf32>
    %cst_32 = arith.constant 1.000000e+00 : f32
    %123 = vector.broadcast %cst_32 : f32 to vector<8x128xf32>
    %124 = arith.addf %123, %122 : vector<8x128xf32>
    %125 = arith.divf %123, %124 : vector<8x128xf32>
    %126 = vector.extract_strided_slice %114 {offsets = [0, 128], sizes = [8, 128], strides = [1, 1]} : vector<8x384xf32> to vector<8x128xf32>
    %127 = vector.extract_strided_slice %117 {offsets = [0, 128], sizes = [8, 128], strides = [1, 1]} : vector<8x384xf32> to vector<8x128xf32>
    %128 = arith.addf %126, %127 : vector<8x128xf32>
    %129 = arith.negf %128 : vector<8x128xf32>
    %130 = math.exp %129 : vector<8x128xf32>
    %cst_33 = arith.constant 1.000000e+00 : f32
    %131 = vector.broadcast %cst_33 : f32 to vector<8x128xf32>
    %132 = arith.addf %131, %130 : vector<8x128xf32>
    %133 = arith.divf %131, %132 : vector<8x128xf32>
    %134 = vector.extract_strided_slice %114 {offsets = [0, 256], sizes = [8, 128], strides = [1, 1]} : vector<8x384xf32> to vector<8x128xf32>
    %135 = vector.extract_strided_slice %117 {offsets = [0, 256], sizes = [8, 128], strides = [1, 1]} : vector<8x384xf32> to vector<8x128xf32>
    %136 = arith.mulf %125, %135 : vector<8x128xf32>
    %137 = arith.addf %134, %136 : vector<8x128xf32>
    %138 = math.tanh %137 : vector<8x128xf32>
    %cst_34 = arith.constant 1.000000e+00 : f32
    %139 = vector.broadcast %cst_34 : f32 to vector<8x128xf32>
    %140 = arith.subf %139, %133 : vector<8x128xf32>
    %141 = arith.mulf %140, %138 : vector<8x128xf32>
    %142 = arith.mulf %133, %110 : vector<8x128xf32>
    %143 = arith.addf %141, %142 : vector<8x128xf32>
    %c4_i32 = arith.constant 4 : i32
    %c8_i32_35 = arith.constant 8 : i32
    %144 = arith.muli %c4_i32, %c8_i32_35 : i32
    %145 = tpu.assume_multiple %144, 8 : i32
    %146 = arith.index_cast %145 : i32 to index
    %c0_36 = arith.constant 0 : index
    %147 = vector.load %arg8[%146, %c0_36] : memref<64x384xf32, #tpu.memory_space<vmem>>, vector<8x384xf32>
    %148 = arith.truncf %143 : vector<8x128xf32> to vector<8x128xbf16>
    %cst_37 = arith.constant dense<0.000000e+00> : vector<8x384xf32>
    %149 = tpu.matmul %148, %7, %cst_37 {dimension_numbers = #tpu.dot_dimension_numbers<[1], [0], [0], [1], [0, 0, 1, 1], [], []>} : vector<8x128xbf16>, vector<128x384xbf16>, vector<8x384xf32> -> vector<8x384xf32>
    %150 = arith.addf %149, %10 : vector<8x384xf32>
    %151 = vector.extract_strided_slice %147 {offsets = [0, 0], sizes = [8, 128], strides = [1, 1]} : vector<8x384xf32> to vector<8x128xf32>
    %152 = vector.extract_strided_slice %150 {offsets = [0, 0], sizes = [8, 128], strides = [1, 1]} : vector<8x384xf32> to vector<8x128xf32>
    %153 = arith.addf %151, %152 : vector<8x128xf32>
    %154 = arith.negf %153 : vector<8x128xf32>
    %155 = math.exp %154 : vector<8x128xf32>
    %cst_38 = arith.constant 1.000000e+00 : f32
    %156 = vector.broadcast %cst_38 : f32 to vector<8x128xf32>
    %157 = arith.addf %156, %155 : vector<8x128xf32>
    %158 = arith.divf %156, %157 : vector<8x128xf32>
    %159 = vector.extract_strided_slice %147 {offsets = [0, 128], sizes = [8, 128], strides = [1, 1]} : vector<8x384xf32> to vector<8x128xf32>
    %160 = vector.extract_strided_slice %150 {offsets = [0, 128], sizes = [8, 128], strides = [1, 1]} : vector<8x384xf32> to vector<8x128xf32>
    %161 = arith.addf %159, %160 : vector<8x128xf32>
    %162 = arith.negf %161 : vector<8x128xf32>
    %163 = math.exp %162 : vector<8x128xf32>
    %cst_39 = arith.constant 1.000000e+00 : f32
    %164 = vector.broadcast %cst_39 : f32 to vector<8x128xf32>
    %165 = arith.addf %164, %163 : vector<8x128xf32>
    %166 = arith.divf %164, %165 : vector<8x128xf32>
    %167 = vector.extract_strided_slice %147 {offsets = [0, 256], sizes = [8, 128], strides = [1, 1]} : vector<8x384xf32> to vector<8x128xf32>
    %168 = vector.extract_strided_slice %150 {offsets = [0, 256], sizes = [8, 128], strides = [1, 1]} : vector<8x384xf32> to vector<8x128xf32>
    %169 = arith.mulf %158, %168 : vector<8x128xf32>
    %170 = arith.addf %167, %169 : vector<8x128xf32>
    %171 = math.tanh %170 : vector<8x128xf32>
    %cst_40 = arith.constant 1.000000e+00 : f32
    %172 = vector.broadcast %cst_40 : f32 to vector<8x128xf32>
    %173 = arith.subf %172, %166 : vector<8x128xf32>
    %174 = arith.mulf %173, %171 : vector<8x128xf32>
    %175 = arith.mulf %166, %143 : vector<8x128xf32>
    %176 = arith.addf %174, %175 : vector<8x128xf32>
    %c5_i32 = arith.constant 5 : i32
    %c8_i32_41 = arith.constant 8 : i32
    %177 = arith.muli %c5_i32, %c8_i32_41 : i32
    %178 = tpu.assume_multiple %177, 8 : i32
    %179 = arith.index_cast %178 : i32 to index
    %c0_42 = arith.constant 0 : index
    %180 = vector.load %arg8[%179, %c0_42] : memref<64x384xf32, #tpu.memory_space<vmem>>, vector<8x384xf32>
    %181 = arith.truncf %176 : vector<8x128xf32> to vector<8x128xbf16>
    %cst_43 = arith.constant dense<0.000000e+00> : vector<8x384xf32>
    %182 = tpu.matmul %181, %7, %cst_43 {dimension_numbers = #tpu.dot_dimension_numbers<[1], [0], [0], [1], [0, 0, 1, 1], [], []>} : vector<8x128xbf16>, vector<128x384xbf16>, vector<8x384xf32> -> vector<8x384xf32>
    %183 = arith.addf %182, %10 : vector<8x384xf32>
    %184 = vector.extract_strided_slice %180 {offsets = [0, 0], sizes = [8, 128], strides = [1, 1]} : vector<8x384xf32> to vector<8x128xf32>
    %185 = vector.extract_strided_slice %183 {offsets = [0, 0], sizes = [8, 128], strides = [1, 1]} : vector<8x384xf32> to vector<8x128xf32>
    %186 = arith.addf %184, %185 : vector<8x128xf32>
    %187 = arith.negf %186 : vector<8x128xf32>
    %188 = math.exp %187 : vector<8x128xf32>
    %cst_44 = arith.constant 1.000000e+00 : f32
    %189 = vector.broadcast %cst_44 : f32 to vector<8x128xf32>
    %190 = arith.addf %189, %188 : vector<8x128xf32>
    %191 = arith.divf %189, %190 : vector<8x128xf32>
    %192 = vector.extract_strided_slice %180 {offsets = [0, 128], sizes = [8, 128], strides = [1, 1]} : vector<8x384xf32> to vector<8x128xf32>
    %193 = vector.extract_strided_slice %183 {offsets = [0, 128], sizes = [8, 128], strides = [1, 1]} : vector<8x384xf32> to vector<8x128xf32>
    %194 = arith.addf %192, %193 : vector<8x128xf32>
    %195 = arith.negf %194 : vector<8x128xf32>
    %196 = math.exp %195 : vector<8x128xf32>
    %cst_45 = arith.constant 1.000000e+00 : f32
    %197 = vector.broadcast %cst_45 : f32 to vector<8x128xf32>
    %198 = arith.addf %197, %196 : vector<8x128xf32>
    %199 = arith.divf %197, %198 : vector<8x128xf32>
    %200 = vector.extract_strided_slice %180 {offsets = [0, 256], sizes = [8, 128], strides = [1, 1]} : vector<8x384xf32> to vector<8x128xf32>
    %201 = vector.extract_strided_slice %183 {offsets = [0, 256], sizes = [8, 128], strides = [1, 1]} : vector<8x384xf32> to vector<8x128xf32>
    %202 = arith.mulf %191, %201 : vector<8x128xf32>
    %203 = arith.addf %200, %202 : vector<8x128xf32>
    %204 = math.tanh %203 : vector<8x128xf32>
    %cst_46 = arith.constant 1.000000e+00 : f32
    %205 = vector.broadcast %cst_46 : f32 to vector<8x128xf32>
    %206 = arith.subf %205, %199 : vector<8x128xf32>
    %207 = arith.mulf %206, %204 : vector<8x128xf32>
    %208 = arith.mulf %199, %176 : vector<8x128xf32>
    %209 = arith.addf %207, %208 : vector<8x128xf32>
    %c6_i32 = arith.constant 6 : i32
    %c8_i32_47 = arith.constant 8 : i32
    %210 = arith.muli %c6_i32, %c8_i32_47 : i32
    %211 = tpu.assume_multiple %210, 8 : i32
    %212 = arith.index_cast %211 : i32 to index
    %c0_48 = arith.constant 0 : index
    %213 = vector.load %arg8[%212, %c0_48] : memref<64x384xf32, #tpu.memory_space<vmem>>, vector<8x384xf32>
    %214 = arith.truncf %209 : vector<8x128xf32> to vector<8x128xbf16>
    %cst_49 = arith.constant dense<0.000000e+00> : vector<8x384xf32>
    %215 = tpu.matmul %214, %7, %cst_49 {dimension_numbers = #tpu.dot_dimension_numbers<[1], [0], [0], [1], [0, 0, 1, 1], [], []>} : vector<8x128xbf16>, vector<128x384xbf16>, vector<8x384xf32> -> vector<8x384xf32>
    %216 = arith.addf %215, %10 : vector<8x384xf32>
    %217 = vector.extract_strided_slice %213 {offsets = [0, 0], sizes = [8, 128], strides = [1, 1]} : vector<8x384xf32> to vector<8x128xf32>
    %218 = vector.extract_strided_slice %216 {offsets = [0, 0], sizes = [8, 128], strides = [1, 1]} : vector<8x384xf32> to vector<8x128xf32>
    %219 = arith.addf %217, %218 : vector<8x128xf32>
    %220 = arith.negf %219 : vector<8x128xf32>
    %221 = math.exp %220 : vector<8x128xf32>
    %cst_50 = arith.constant 1.000000e+00 : f32
    %222 = vector.broadcast %cst_50 : f32 to vector<8x128xf32>
    %223 = arith.addf %222, %221 : vector<8x128xf32>
    %224 = arith.divf %222, %223 : vector<8x128xf32>
    %225 = vector.extract_strided_slice %213 {offsets = [0, 128], sizes = [8, 128], strides = [1, 1]} : vector<8x384xf32> to vector<8x128xf32>
    %226 = vector.extract_strided_slice %216 {offsets = [0, 128], sizes = [8, 128], strides = [1, 1]} : vector<8x384xf32> to vector<8x128xf32>
    %227 = arith.addf %225, %226 : vector<8x128xf32>
    %228 = arith.negf %227 : vector<8x128xf32>
    %229 = math.exp %228 : vector<8x128xf32>
    %cst_51 = arith.constant 1.000000e+00 : f32
    %230 = vector.broadcast %cst_51 : f32 to vector<8x128xf32>
    %231 = arith.addf %230, %229 : vector<8x128xf32>
    %232 = arith.divf %230, %231 : vector<8x128xf32>
    %233 = vector.extract_strided_slice %213 {offsets = [0, 256], sizes = [8, 128], strides = [1, 1]} : vector<8x384xf32> to vector<8x128xf32>
    %234 = vector.extract_strided_slice %216 {offsets = [0, 256], sizes = [8, 128], strides = [1, 1]} : vector<8x384xf32> to vector<8x128xf32>
    %235 = arith.mulf %224, %234 : vector<8x128xf32>
    %236 = arith.addf %233, %235 : vector<8x128xf32>
    %237 = math.tanh %236 : vector<8x128xf32>
    %cst_52 = arith.constant 1.000000e+00 : f32
    %238 = vector.broadcast %cst_52 : f32 to vector<8x128xf32>
    %239 = arith.subf %238, %232 : vector<8x128xf32>
    %240 = arith.mulf %239, %237 : vector<8x128xf32>
    %241 = arith.mulf %232, %209 : vector<8x128xf32>
    %242 = arith.addf %240, %241 : vector<8x128xf32>
    %c7_i32 = arith.constant 7 : i32
    %c8_i32_53 = arith.constant 8 : i32
    %243 = arith.muli %c7_i32, %c8_i32_53 : i32
    %244 = tpu.assume_multiple %243, 8 : i32
    %245 = arith.index_cast %244 : i32 to index
    %c0_54 = arith.constant 0 : index
    %246 = vector.load %arg8[%245, %c0_54] : memref<64x384xf32, #tpu.memory_space<vmem>>, vector<8x384xf32>
    %247 = arith.truncf %242 : vector<8x128xf32> to vector<8x128xbf16>
    %cst_55 = arith.constant dense<0.000000e+00> : vector<8x384xf32>
    %248 = tpu.matmul %247, %7, %cst_55 {dimension_numbers = #tpu.dot_dimension_numbers<[1], [0], [0], [1], [0, 0, 1, 1], [], []>} : vector<8x128xbf16>, vector<128x384xbf16>, vector<8x384xf32> -> vector<8x384xf32>
    %249 = arith.addf %248, %10 : vector<8x384xf32>
    %250 = vector.extract_strided_slice %246 {offsets = [0, 0], sizes = [8, 128], strides = [1, 1]} : vector<8x384xf32> to vector<8x128xf32>
    %251 = vector.extract_strided_slice %249 {offsets = [0, 0], sizes = [8, 128], strides = [1, 1]} : vector<8x384xf32> to vector<8x128xf32>
    %252 = arith.addf %250, %251 : vector<8x128xf32>
    %253 = arith.negf %252 : vector<8x128xf32>
    %254 = math.exp %253 : vector<8x128xf32>
    %cst_56 = arith.constant 1.000000e+00 : f32
    %255 = vector.broadcast %cst_56 : f32 to vector<8x128xf32>
    %256 = arith.addf %255, %254 : vector<8x128xf32>
    %257 = arith.divf %255, %256 : vector<8x128xf32>
    %258 = vector.extract_strided_slice %246 {offsets = [0, 128], sizes = [8, 128], strides = [1, 1]} : vector<8x384xf32> to vector<8x128xf32>
    %259 = vector.extract_strided_slice %249 {offsets = [0, 128], sizes = [8, 128], strides = [1, 1]} : vector<8x384xf32> to vector<8x128xf32>
    %260 = arith.addf %258, %259 : vector<8x128xf32>
    %261 = arith.negf %260 : vector<8x128xf32>
    %262 = math.exp %261 : vector<8x128xf32>
    %cst_57 = arith.constant 1.000000e+00 : f32
    %263 = vector.broadcast %cst_57 : f32 to vector<8x128xf32>
    %264 = arith.addf %263, %262 : vector<8x128xf32>
    %265 = arith.divf %263, %264 : vector<8x128xf32>
    %266 = vector.extract_strided_slice %246 {offsets = [0, 256], sizes = [8, 128], strides = [1, 1]} : vector<8x384xf32> to vector<8x128xf32>
    %267 = vector.extract_strided_slice %249 {offsets = [0, 256], sizes = [8, 128], strides = [1, 1]} : vector<8x384xf32> to vector<8x128xf32>
    %268 = arith.mulf %257, %267 : vector<8x128xf32>
    %269 = arith.addf %266, %268 : vector<8x128xf32>
    %270 = math.tanh %269 : vector<8x128xf32>
    %cst_58 = arith.constant 1.000000e+00 : f32
    %271 = vector.broadcast %cst_58 : f32 to vector<8x128xf32>
    %272 = arith.subf %271, %265 : vector<8x128xf32>
    %273 = arith.mulf %272, %270 : vector<8x128xf32>
    %274 = arith.mulf %265, %242 : vector<8x128xf32>
    %275 = arith.addf %273, %274 : vector<8x128xf32>
    %c8_i32_59 = arith.constant 8 : i32
    %c0_60 = arith.constant 0 : index
    %c0_61 = arith.constant 0 : index
    %276 = vector.load %arg5[%c0_60, %c0_61] : memref<128x128xf32, #tpu.memory_space<vmem>>, vector<128x128xf32>
    %cst_62 = arith.constant dense<0.000000e+00> : vector<8x128xf32>
    %277 = tpu.matmul %275, %276, %cst_62 {dimension_numbers = #tpu.dot_dimension_numbers<[1], [0], [0], [1], [0, 0, 1, 1], [], []>} : vector<8x128xf32>, vector<128x128xf32>, vector<8x128xf32> -> vector<8x128xf32>
    %c0_63 = arith.constant 0 : index
    %c0_64 = arith.constant 0 : index
    %278 = vector.load %arg6[%c0_63, %c0_64] : memref<1x128xf32, #tpu.memory_space<vmem>>, vector<1x128xf32>
    %279 = vector.broadcast %278 : vector<1x128xf32> to vector<8x128xf32>
    %280 = arith.addf %277, %279 : vector<8x128xf32>
    %c0_65 = arith.constant 0 : index
    %c0_66 = arith.constant 0 : index
    %281 = vector.load %arg7[%c0_65, %c0_66] : memref<8x128xf32, #tpu.memory_space<vmem>>, vector<8x128xf32>
    tpu.vector_store %arg7[%c0_65, %c0_66], %280 {strides = array<i32>} : memref<8x128xf32, #tpu.memory_space<vmem>>, vector<8x128xf32>,
    return
  }
}

</mosaic_0001>

<bundles_post_ra>
// kernel: forward.1
= control target key start
LH: loop header
LB: loop body
LE: loop exit
PB: predicated region body
PF: predicated region fallthrough
CT: control target
= control target key end

     0   :  { %12 = vsyncpa [#allocation4], 0  ;;  %s2692_s0 = inlined_call_operand.vmem [shape: f32[64,16], index: 0, kind: input, shape index: {}]   ;;  %s2693_s1 = inlined_call_operand.vmem [shape: f32[16,384], index: 1, kind: input, shape index: {}]   ;;  %s2694_s2 = inlined_call_operand.vmem [shape: f32[1,384], index: 2, kind: input, shape index: {}]   ;;  %s2695_s3 = inlined_call_operand.hbm [shape: bf16[128,384], index: 3, kind: input, shape index: {}]   ;;  %s2696_s4 = inlined_call_operand.vmem [shape: f32[1,384], index: 4, kind: input, shape index: {}]   ;;  %s2697_s5 = inlined_call_operand.hbm [shape: f32[128,128], index: 5, kind: input, shape index: {}]   ;;  %s2698_s6 = inlined_call_operand.vmem [shape: f32[1,128], index: 6, kind: input, shape index: {}]   ;;  %s2699_s7 = inlined_call_operand.vmem [shape: f32[8,128], index: 7, kind: output, shape index: {}]  }
   0x1   :  { %13 = vsyncpa [#allocation6], 0  ;;  %s2064_s24 = smov [#allocation3]  }
   0x2   :  { %s25_s25 = sshll.u32 %s2064_s24, 4  ;;  %s26_s25 = int_to_ptr.vmem [resolvable:$true] %s25_s25 }
   0x3   :  { %s2028_s26 = scalar_lea.vmem %s26_s25, 3072  ;;  %p2033_p1 = scmp.lt.s32.totalorder %s26_s25, %s26_s25 }
   0x4   :  { %p2029_p0 = scmp.ne.s32.totalorder %s26_s25, %s2028_s26  ;;  %p2034_p2 = scmp.lt.s32.totalorder %s2028_s26, %s2028_s26 }
   0x6   :  { %p2035_p3 = por %p2034_p2, %p2033_p1 }
   0x8   :  { %p2036_p4 = pnand %p2035_p3, %p2029_p0 }
   0xa   :  { %2039 = shalt.err (!%p2036_p4)
}
   0xb   :  { %s2065_s27 = smov 192   ;;  %s2066_s28 = smov 12  }
   0xc   :  { %31 = dma.hbm_to_vmem [thread:$0]  %s2695_s3, 3072, %s26_s25, [#allocation4], %s2065_s27, %s2065_s27, %s2066_s28  }
   0xd   :  { %s2067_s8 = smov [#allocation5]  }
   0xe   :  { %s39_s9 = sshll.u32 %s2067_s8, 4  ;;  %s40_s9 = int_to_ptr.vmem [resolvable:$true] %s39_s9 }
   0xf   :  { %s2048_s10 = scalar_lea.vmem %s40_s9, 2048  ;;  %p2053_p6 = scmp.lt.s32.totalorder %s40_s9, %s40_s9 }
  0x10   :  { %p2049_p5 = scmp.ne.s32.totalorder %s40_s9, %s2048_s10  ;;  %p2054_p7 = scmp.lt.s32.totalorder %s2048_s10, %s2048_s10 }
  0x12   :  { %p2055_p8 = por %p2054_p7, %p2053_p6 }
  0x14   :  { %p2056_p9 = pnand %p2055_p8, %p2049_p5 }
  0x16   :  { %2059 = shalt.err (!%p2056_p9)
}
  0x17   :  { %s2068_s11 = smov 128   ;;  %s2069_s12 = smov 8  }
  0x18   :  { %45 = dma.hbm_to_vmem [thread:$0]  %s2697_s5, 2048, %s40_s9, [#allocation6], %s2068_s11, %s2068_s11, %s2069_s12  }
  0x19   :  { %2060 = dma.done.wait [#allocation4], 3072  }
  0x1a   :  { %2061 = vsyncadd [#allocation4], 4294964224 }
  0x1b   :  { %2062 = dma.done.wait [#allocation6], 2048  }
  0x1c   :  { %2063 = vsyncadd [#allocation6], 4294965248  ;;  %v2702_v0 = vmov 0.0   ;;  %v67_v1 = vld [vmem:[%s2693_s1 + $0x20] sm:$0xff]  ;;  %v66_v2 = vld [vmem:[%s2693_s1 + $0x18] sm:$0xff]  ;;  %vm86_vm0 = vcmask 130048   ;;  %v71_v40 = vlaneseq }
  0x1d   :  { %175 = vmatprep.mubr.f32.mxu0 %v2702_v0  ;;  %v64_v3 = vld [vmem:[%s2693_s1 + $0x8] sm:$0xff]  ;;  %139 = vmatprep.subr.mxu0 %v67_v1  ;;  %v63_v4 = vld [vmem:[%s2693_s1] sm:$0xff]  ;;  %v2149_v10 = vld [vmem:[#allocation3 + $0x90] ss:$12 sps:$4 sm:$0xff]   ;;  %v2700_v36 = vmov 0   ;;  %vm2072_vm1 = vmmov 0  }
  0x1e   :  { %v55_v5 = vld [vmem:[%s2692_s0] sm:$0xff]  ;;  %140 = vmatpush1.msra.mxu0 %v66_v2  ;;  %v2135_v6 = vld [vmem:[#allocation3 + $0xac] ss:$12 sps:$4 sm:$0xff]   ;;  %v2137_v7 = vld [vmem:[#allocation3 + $0xa8] ss:$12 sps:$4 sm:$0xff]   ;;  %v2307_v41 = vshrl.u32 %v71_v40, 7 }
  0x1f   :  { %1668 = vmatprep.mubr.msk.f32.mxu1 %vm86_vm0, %v55_v5  ;;  %141 = vmatprep.subr.mxu0 %v64_v3  ;;  %v2140_v8 = vld [vmem:[#allocation3 + $0x94] ss:$12 sps:$4 sm:$0xff]   ;;  %v56_v9 = vld [vmem:[%s2692_s0 + $0x8] sm:$0xff]  ;;  %v2160_v13 = vld [vmem:[#allocation3 + $0x78] ss:$12 sps:$4 sm:$0xff]  }
  0x20   :  { %142 = vmatpush1.msra.mxu0 %v63_v4  ;;  %v2152_v11 = vld [vmem:[#allocation3 + $0x7c] ss:$12 sps:$4 sm:$0xff]   ;;  %v57_v12 = vld [vmem:[%s2692_s0 + $0x10] sm:$0xff]  ;;  %v2177_v18 = vld [vmem:[#allocation3 + $0x60] ss:$12 sps:$4 sm:$0xff]   ;;  %v73_v42 = vsub.s32 0, %v2307_v41 }
  0x21   :  { %1508 = vmatmul.mubr.msk.f32.vlgmr.msra.gmra.mxu0 %vm86_vm0, %v55_v5  ;;  %536 = vmatprep.subr.bf16.mxu0 %v2135_v6  ;;  %v2163_v14 = vld [vmem:[#allocation3 + $0x64] ss:$12 sps:$4 sm:$0xff]   ;;  %v68_v15 = vld [vmem:[%s2693_s1 + $0x28] sm:$0xff]  ;;  %v58_v16 = vld [vmem:[%s2692_s0 + $0x18] sm:$0xff]  ;;  %v77_v45 = vsub.s32 1, %v2307_v41  ;;  %v2704_v54 = vsub.s32 2, %v2307_v41 }
  0x22   :  { %537 = vmatpush1.bf16.msra.mxu0 %v2137_v7  ;;  %181 = vmatprep.mubr.f32.mxu0 %v2702_v0  ;;  %v65_v17 = vld [vmem:[%s2693_s1 + $0x10] sm:$0xff]  ;;  %v2180_v19 = vld [vmem:[#allocation3 + $0x4c] ss:$12 sps:$4 sm:$0xff]   ;;  %v59_v20 = vld [vmem:[%s2692_s0 + $0x20] sm:$0xff] }
  0x23   :  { %538 = vmatprep.subr.bf16.mxu0 %v2140_v8  ;;  %1664 = vmatprep.subr.mxu1 %v68_v15  ;;  %v2186_v21 = vld [vmem:[#allocation3 + $0xb0] ss:$12 sps:$4 sm:$0xff]   ;;  %v2190_v22 = vld [vmem:[#allocation3 + $0x48] ss:$12 sps:$4 sm:$0xff]   ;;  %v2202_v25 = vld [vmem:[#allocation3 + $0x98] ss:$12 sps:$4 sm:$0xff]  }
  0x24   :  { %1665 = vmatpush3.msra.mxu1 %v68_v15  ;;  %v2193_v23 = vld [vmem:[#allocation3 + $0x34] ss:$12 sps:$4 sm:$0xff]   ;;  %v60_v24 = vld [vmem:[%s2692_s0 + $0x28] sm:$0xff]  ;;  %v2206_v26 = vld [vmem:[#allocation3 + $0x30] ss:$12 sps:$4 sm:$0xff]  }
  0x25   :  { %1509 = vmatmul.mubr.msk.f32.gmra.mxu0 %vm86_vm0, %v56_v9  ;;  %1666 = vmatprep.subr.mxu1 %v65_v17  ;;  %v2209_v27 = vld [vmem:[#allocation3 + $0x1c] ss:$12 sps:$4 sm:$0xff]   ;;  %v2215_v28 = vld [vmem:[#allocation3 + $0x80] ss:$12 sps:$4 sm:$0xff]   ;;  %v61_v29 = vld [vmem:[%s2692_s0 + $0x30] sm:$0xff] }
  0x26   :  { %539 = vmatpush1.bf16.msra.mxu0 %v2149_v10  ;;  %187 = vmatprep.mubr.f32.mxu0 %v2702_v0  ;;  %v2222_v30 = vld [vmem:[#allocation3 + $0x18] ss:$12 sps:$4 sm:$0xff]   ;;  %v2231_v32 = vld [vmem:[#allocation3 + $0x68] ss:$12 sps:$4 sm:$0xff]   ;;  %v2238_v34 = vld [vmem:[#allocation3] ss:$12 sps:$4 sm:$0xff]  }
  0x27   :  { %540 = vmatprep.subr.bf16.mxu0 %v2152_v11  ;;  %1667 = vmatpush3.msra.mxu1 %v65_v17  ;;  %v2225_v31 = vld [vmem:[#allocation3 + $0x4] ss:$12 sps:$4 sm:$0xff]   ;;  %v62_v33 = vld [vmem:[%s2692_s0 + $0x38] sm:$0xff]  ;;  %v2265_v38 = vld [vmem:[#allocation3 + $0x20] ss:$12 sps:$4 sm:$0xff]  }
  0x28   :  { %1680 = vmatprep.subr.bf16.mxu1 %v2702_v0  ;;  %1669 = vmatmul.mubr.msk.f32.vlgmr.msra.gmra.mxu1 %vm86_vm0, %v56_v9  ;;  %v2245_v35 = vld [vmem:[#allocation3 + $0x50] ss:$12 sps:$4 sm:$0xff]   ;;  %v2255_v37 = vld [vmem:[#allocation3 + $0x38] ss:$12 sps:$4 sm:$0xff]   ;;  %v2271_v39 = vld [vmem:[#allocation3 + $0x8] ss:$12 sps:$4 sm:$0xff]  }
  0x29   :  { %1510 = vmatmul.mubr.msk.f32.gmra.mxu0 %vm86_vm0, %v57_v12  ;;  %1681 = vmatpush3.bf16.msra.mxu1 %v2186_v21  ;;  %v69_v43 = vld [vmem:[%s2694_s2] sm:$0x7] }
  0x2a   :  { %541 = vmatpush1.bf16.msra.mxu0 %v2160_v13  ;;  %193 = vmatprep.mubr.f32.mxu0 %v2702_v0  ;;  %v74_v47 = vrot.slane %v69_v43, %v73_v42  ;;  %v78_v49 = vrot.slane %v69_v43, %v77_v45  ;;  %v2325_v59 = vrot.slane %v69_v43, %v2704_v54 }
  0x2b   :  { %542 = vmatprep.subr.bf16.mxu0 %v2163_v14  ;;  %1682 = vmatprep.subr.bf16.mxu1 %v2702_v0 }
  0x2c   :  { %1671 = vmatprep.mubr.msk.f32.mxu1 %vm86_vm0, %v57_v12 }
  0x2d   :  { %1511 = vmatmul.mubr.msk.f32.gmra.mxu0 %vm86_vm0, %v58_v16  ;;  %1683 = vmatpush3.bf16.msra.mxu1 %v2202_v25 }
  0x2e   :  { %543 = vmatpush1.bf16.msra.mxu0 %v2177_v18  ;;  %199 = vmatprep.mubr.f32.mxu0 %v2702_v0 }
  0x2f   :  { %544 = vmatprep.subr.bf16.mxu0 %v2180_v19  ;;  %1684 = vmatprep.subr.bf16.mxu1 %v2702_v0 }
  0x30   :  { %1672 = vmatmul.mubr.msk.f32.gmra.mxu1 %vm86_vm0, %v58_v16 }
  0x31   :  { %1512 = vmatmul.mubr.msk.f32.gmra.mxu0 %vm86_vm0, %v59_v20  ;;  %1685 = vmatpush3.bf16.msra.mxu1 %v2215_v28 }
  0x32   :  { %545 = vmatpush1.bf16.msra.mxu0 %v2190_v22  ;;  %205 = vmatprep.mubr.f32.mxu0 %v2702_v0 }
  0x33   :  { %546 = vmatprep.subr.bf16.mxu0 %v2193_v23  ;;  %1686 = vmatprep.subr.bf16.mxu1 %v2702_v0 }
  0x34   :  { %1674 = vmatprep.mubr.msk.f32.mxu1 %vm86_vm0, %v59_v20 }
  0x35   :  { %1513 = vmatmul.mubr.msk.f32.gmra.mxu0 %vm86_vm0, %v60_v24  ;;  %1687 = vmatpush3.bf16.msra.mxu1 %v2231_v32 }
  0x36   :  { %547 = vmatpush1.bf16.msra.mxu0 %v2206_v26  ;;  %211 = vmatprep.mubr.f32.mxu0 %v2702_v0 }
  0x37   :  { %548 = vmatprep.subr.bf16.mxu0 %v2209_v27  ;;  %1688 = vmatprep.subr.bf16.mxu1 %v2702_v0 }
  0x38   :  { %1675 = vmatmul.mubr.msk.f32.gmra.mxu1 %vm86_vm0, %v60_v24 }
  0x39   :  { %1514 = vmatmul.mubr.msk.f32.gmra.mxu0 %vm86_vm0, %v61_v29  ;;  %1677 = vmatprep.mubr.msk.f32.mxu1 %vm86_vm0, %v61_v29 }
  0x3a   :  { %549 = vmatpush1.bf16.msra.mxu0 %v2222_v30  ;;  %217 = vmatprep.mubr.f32.mxu0 %v2702_v0 }
  0x3b   :  { %550 = vmatprep.subr.bf16.mxu0 %v2225_v31  ;;  %1689 = vmatpush3.bf16.msra.mxu1 %v2245_v35 }
  0x3c   :  { %1690 = vmatprep.subr.bf16.mxu1 %v2702_v0  ;;  %1678 = vmatmul.mubr.msk.f32.gmra.mxu1 %vm86_vm0, %v62_v33 }
  0x3d   :  { %1515 = vmatmul.mubr.msk.f32.gmra.mxu0 %vm86_vm0, %v62_v33  ;;  %1696 = vmatprep.mubr.msk.bf16.mxu1 %vm2072_vm1, %v2702_v0 }
  0x3e   :  { %551 = vmatpush1.bf16.msra.mxu0 %v2238_v34  ;;  %568 = vmatprep.mubr.bf16.mxu0 %v2700_v36 }
  0x3f   :  { %645 = vmatprep.subr.bf16.mxu0 %v2135_v6  ;;  %1691 = vmatpush3.bf16.msra.mxu1 %v2255_v37 }
  0x40   :  { %1692 = vmatprep.subr.bf16.mxu1 %v2702_v0 }
  0x41   :  { %569 = vmatmul.mubr.bf16.vlgmr.msra.gmra.mxu0 %v2700_v36 }
  0x42   :  { %646 = vmatpush1.bf16.msra.mxu0 %v2137_v7  ;;  %677 = vmatprep.mubr.bf16.mxu0 %v2700_v36 }
  0x43   :  { %647 = vmatprep.subr.bf16.mxu0 %v2140_v8  ;;  %1693 = vmatpush3.bf16.msra.mxu1 %v2265_v38 }
  0x44   :  { %1694 = vmatprep.subr.bf16.mxu1 %v2702_v0 }
  0x46   :  { %648 = vmatpush1.bf16.msra.mxu0 %v2149_v10 }
  0x47   :  { %649 = vmatprep.subr.bf16.mxu0 %v2152_v11  ;;  %1695 = vmatpush3.bf16.msra.mxu1 %v2271_v39 }
  0x48   :  { %1700 = vmatprep.subr.bf16.mxu1 %v2702_v0 }
  0x4a   :  { %650 = vmatpush1.bf16.msra.mxu0 %v2160_v13  ;;  %1697 = vmatmul.mubr.bf16.vlgmr.msra.gmra.mxu1 %v2700_v36 }
  0x4b   :  { %651 = vmatprep.subr.bf16.mxu0 %v2163_v14  ;;  %1701 = vmatpush3.bf16.msra.mxu1 %v2186_v21 }
  0x4c   :  { %1716 = vmatprep.mubr.msk.bf16.mxu1 %vm2072_vm1, %v2702_v0  ;;  %1702 = vmatprep.subr.bf16.mxu1 %v2702_v0 }
  0x4e   :  { %652 = vmatpush1.bf16.msra.mxu0 %v2177_v18 }
  0x4f   :  { %653 = vmatprep.subr.bf16.mxu0 %v2180_v19  ;;  %1703 = vmatpush3.bf16.msra.mxu1 %v2202_v25 }
  0x50   :  { %1704 = vmatprep.subr.bf16.mxu1 %v2702_v0 }
  0x52   :  { %654 = vmatpush1.bf16.msra.mxu0 %v2190_v22 }
  0x53   :  { %655 = vmatprep.subr.bf16.mxu0 %v2193_v23  ;;  %1705 = vmatpush3.bf16.msra.mxu1 %v2215_v28 }
  0x54   :  { %1706 = vmatprep.subr.bf16.mxu1 %v2702_v0 }
  0x56   :  { %656 = vmatpush1.bf16.msra.mxu0 %v2206_v26 }
  0x57   :  { %657 = vmatprep.subr.bf16.mxu0 %v2209_v27  ;;  %1707 = vmatpush3.bf16.msra.mxu1 %v2231_v32 }
  0x58   :  { %1708 = vmatprep.subr.bf16.mxu1 %v2702_v0 }
  0x5a   :  { %658 = vmatpush1.bf16.msra.mxu0 %v2222_v30 }
  0x5b   :  { %659 = vmatprep.subr.bf16.mxu0 %v2225_v31  ;;  %1709 = vmatpush3.bf16.msra.mxu1 %v2245_v35 }
  0x5c   :  { %1710 = vmatprep.subr.bf16.mxu1 %v2702_v0 }
  0x5e   :  { %660 = vmatpush1.bf16.msra.mxu0 %v2238_v34 }
  0x5f   :  { %754 = vmatprep.subr.bf16.mxu0 %v2135_v6  ;;  %1711 = vmatpush3.bf16.msra.mxu1 %v2255_v37 }
  0x60   :  { %1712 = vmatprep.subr.bf16.mxu1 %v2702_v0 }
  0x63   :  { %1713 = vmatpush3.bf16.msra.mxu1 %v2265_v38 }
  0x64   :  { %1714 = vmatprep.subr.bf16.mxu1 %v2702_v0 }
  0x67   :  { %1715 = vmatpush3.bf16.msra.mxu1 %v2271_v39 }
  0x68   :  { %1720 = vmatprep.subr.bf16.mxu1 %v2702_v0 }
  0xe1   :  { %v177_v44 = vpop.f32.mrf.mxu0 }
  0xe3   :  { %v179_v46 = vpop.f32.mrf.mxu0 }
  0xe5   :  { %v183_v48 = vpop.f32.mrf.mxu0 }
  0xe6   :  { %v2314_v50 = vadd.f32 %v183_v48, %v74_v47  ;;  %v385_v48 = vld [vmem:[%s2696_s4] sm:$0x7] }
  0xe7   :  { %v185_v51 = vpop.f32.mrf.mxu0  ;;  %v2365_v36 = vrot.slane %v385_v48, %v77_v45  ;;  %v180_v45 = vadd.f32 %v179_v46, %v78_v49 }
  0xe8   :  { %v2316_v52 = vadd.f32 %v185_v51, %v78_v49  ;;  %v1670_v63 = vpop.f32.mrf.mxu1 }
  0xe9   :  { %v189_v53 = vpop.f32.mrf.mxu0  ;;  %v2332_v2 = vadd.f32 %v1670_v63, %v2325_v59 }
  0xea   :  { %v2319_v55 = vadd.f32 %v189_v53, %v74_v47  ;;  %v290_v15 = vpop.f32.mrf.mxu1 }
  0xeb   :  { %v191_v56 = vpop.f32.mrf.mxu0 }
  0xec   :  { %v2321_v57 = vadd.f32 %v191_v56, %v78_v49 }
  0xed   :  { %v195_v58 = vpop.f32.mrf.mxu0 }
  0xee   :  { %v2327_v60 = vadd.f32 %v195_v58, %v74_v47 }
  0xef   :  { %v197_v61 = vpop.f32.mrf.mxu0 }
  0xf0   :  { %v2329_v62 = vadd.f32 %v197_v61, %v78_v49  ;;  %v1673_v20 = vpop.f32.mrf.mxu1  ;;  %v2357_v61 = vrot.slane %v385_v48, %v73_v42 }
  0xf1   :  { %v201_v1 = vpop.f32.mrf.mxu0  ;;  %v2343_v29 = vadd.f32 %v1673_v20, %v2325_v59 }
  0xf2   :  { %v2334_v3 = vadd.f32 %v201_v1, %v74_v47  ;;  %v300_v40 = vpop.f32.mrf.mxu1 }
  0xf3   :  { %v203_v4 = vpop.f32.mrf.mxu0  ;;  %v2351_v51 = vadd.f32 %v300_v40, %v2325_v59 }
  0xf4   :  { %v2336_v5 = vadd.f32 %v203_v4, %v78_v49 }
  0xf5   :  { %v207_v9 = vpop.f32.mrf.mxu0 }
  0xf6   :  { %v2338_v12 = vadd.f32 %v207_v9, %v74_v47 }
  0xf7   :  { %v209_v16 = vpop.f32.mrf.mxu0 }
  0xf8   :  { %v2340_v17 = vadd.f32 %v209_v16, %v78_v49  ;;  %v1676_v1 = vpop.f32.mrf.mxu1 }
  0xf9   :  { %v213_v24 = vpop.f32.mrf.mxu0  ;;  %v2362_v9 = vadd.f32 %v1676_v1, %v2325_v59 }
  0xfa   :  { %v2345_v33 = vadd.f32 %v213_v24, %v74_v47  ;;  %v310_v20 = vpop.f32.mrf.mxu1  ;;  %v178_v24 = vadd.f32 %v177_v44, %v74_v47 }
  0xfb   :  { %v215_v43 = vpop.f32.mrf.mxu0 }
  0xfc   :  { %2705 = vst [vmem:[#allocation9_spill] sm:$0xff] %v2345_v33  ;;  %v2353_v53 = vadd.f32 %v215_v43, %v78_v49  ;;  %v2368_v43 = vadd.f32 %v310_v20, %v2325_v59  ;;  %v1679_v42 = vpop.f32.mrf.mxu1 }
  0xfd   :  { %v219_v56 = vpop.f32.mrf.mxu0  ;;  %v2371_v54 = vadd.f32 %v1679_v42, %v2325_v59 }
  0xfe   :  { %2706 = vst [vmem:[#allocation10_spill] sm:$0xff] %v2353_v53  ;;  %v2355_v58 = vadd.f32 %v219_v56, %v74_v47 }
  0xff   :  { %v221_v63 = vpop.f32.mrf.mxu0  ;;  %2709 = vst [vmem:[#allocation13_spill] sm:$0xff] %v2371_v54 }
 0x100   :  { %2707 = vst [vmem:[#allocation11_spill] sm:$0xff] %v2355_v58  ;;  %v2359_v4 = vadd.f32 %v221_v63, %v78_v49  ;;  %v291_v49 = vadd.f32 %v290_v15, %v2325_v59  ;;  %v2712_v15 = vmov 0  }
 0x101   :  { %v570_v16 = vpop.f32.mrf.mxu0 }
 0x102   :  { %2708 = vst [vmem:[#allocation12_spill] sm:$0xff] %v2359_v4  ;;  %v571_v40 = vadd.f32 %v570_v16, %v2357_v61  ;;  %v320_v4 = vpop.f32.mrf.mxu1 }
 0x103   :  { %v572_v56 = vpop.f32.mrf.mxu0  ;;  %v2375_v44 = vadd.f32 %v320_v4, %v2325_v59  ;;  %v2711_v59 = vmov 0.0  }
 0x104   :  { %v617_v0 = vadd.f32 %v571_v40, %v178_v24  ;;  %v573_v58 = vadd.f32 %v572_v56, %v2365_v36 }
 0x105   :  { %v574_v63 = vpop.f32.mrf.mxu0 }
 0x106   :  { %v1548_v1 = vmul.f32 -1.442695, %v617_v0  ;;  %v624_v16 = vadd.f32 %v573_v58, %v180_v45  ;;  %v2710_v0 = vsub.s32 2, %v2307_v41 }
 0x107   :  { %v575_v47 = vpop.f32.mrf.mxu0 }
 0x108   :  { %1916 = vpow2.f32 %v1548_v1  ;;  %v1549_v20 = vmul.f32 -1.442695, %v624_v16  ;;  %v2379_v63 = vrot.slane %v385_v48, %v2710_v0 }
 0x10a   :  { %v611_v53 = vpop.f32.mrf.mxu1  ;;  %1918 = vpow2.f32 %v1549_v20 }
 0x10b   :  { %v612_v47 = vadd.f32 %v611_v53, %v2379_v63 }
 0x10c   :  { %v1698_v33 = vpop.f32.mrf.mxu1 }
 0x10e   :  { %v614_v24 = vpop.f32.mrf.mxu1 }
 0x110   :  { %v1699_v54 = vpop.f32.mrf.mxu1 }
 0x115   :  { %v1917_v40 = vpop.eup %1916 }
 0x116   :  { %v621_v42 = vadd.f32 1.0, %v1917_v40 }
 0x117   :  { %v1919_v56 = vpop.eup %1918 }
 0x118   :  { %1920 = vrcp.f32 %v621_v42  ;;  %v628_v4 = vadd.f32 1.0, %v1919_v56 }
 0x11a   :  { %1922 = vrcp.f32 %v628_v4 }
 0x125   :  { %v1921_v46 = vpop.eup %1920 }
 0x126   :  { %v631_v58 = vmul.f32 %v1921_v46, %v612_v47 }
 0x127   :  { %v1923_v33 = vpop.eup %1922 }
 0x128   :  { %v632_v1 = vadd.f32 %v631_v58, %v291_v49  ;;  %v634_v45 = vsub.f32 1.0, %v1923_v33  ;;  %v636_v20 = vmul.f32 0.0, %v1923_v33 }
 0x12a   :  { %1924 = vtanh.f32 %v632_v1 }
 0x137   :  { %v1925_v16 = vpop.eup %1924 }
 0x138   :  { %v635_v54 = vmul.f32 %v1925_v16, %v634_v45 }
 0x13a   :  { %v2383_v24 = vadd.f32 %v636_v20, %v635_v54 }
 0x13c   :  { %v644_v41 = vpack.c.bf16 %v2383_v24, %v2383_v24 }
 0x13e   :  { %678 = vmatmul.mubr.bf16.vlgmr.msra.gmra.mxu0 %v644_v41  ;;  %1717 = vmatmul.mubr.bf16.vlgmr.msra.gmra.mxu1 %v644_v41 }
 0x13f   :  { %755 = vmatpush1.bf16.msra.mxu0 %v2137_v7  ;;  %1721 = vmatpush3.bf16.msra.mxu1 %v2186_v21 }
 0x140   :  { %756 = vmatprep.subr.bf16.mxu0 %v2140_v8  ;;  %1722 = vmatprep.subr.bf16.mxu1 %v2711_v59 }
 0x141   :  { %786 = vmatprep.mubr.bf16.mxu0 %v2712_v15  ;;  %1736 = vmatprep.mubr.msk.bf16.mxu1 %vm2072_vm1, %v2711_v59 }
 0x143   :  { %757 = vmatpush1.bf16.msra.mxu0 %v2149_v10  ;;  %1723 = vmatpush3.bf16.msra.mxu1 %v2202_v25 }
 0x144   :  { %758 = vmatprep.subr.bf16.mxu0 %v2152_v11  ;;  %1724 = vmatprep.subr.bf16.mxu1 %v2711_v59 }
 0x147   :  { %759 = vmatpush1.bf16.msra.mxu0 %v2160_v13  ;;  %1725 = vmatpush3.bf16.msra.mxu1 %v2215_v28 }
 0x148   :  { %760 = vmatprep.subr.bf16.mxu0 %v2163_v14  ;;  %1726 = vmatprep.subr.bf16.mxu1 %v2711_v59 }
 0x14b   :  { %761 = vmatpush1.bf16.msra.mxu0 %v2177_v18  ;;  %1727 = vmatpush3.bf16.msra.mxu1 %v2231_v32 }
 0x14c   :  { %762 = vmatprep.subr.bf16.mxu0 %v2180_v19  ;;  %1728 = vmatprep.subr.bf16.mxu1 %v2711_v59 }
 0x14f   :  { %763 = vmatpush1.bf16.msra.mxu0 %v2190_v22  ;;  %1729 = vmatpush3.bf16.msra.mxu1 %v2245_v35 }
 0x150   :  { %764 = vmatprep.subr.bf16.mxu0 %v2193_v23  ;;  %1730 = vmatprep.subr.bf16.mxu1 %v2711_v59 }
 0x153   :  { %765 = vmatpush1.bf16.msra.mxu0 %v2206_v26  ;;  %1731 = vmatpush3.bf16.msra.mxu1 %v2255_v37 }
 0x154   :  { %766 = vmatprep.subr.bf16.mxu0 %v2209_v27  ;;  %1732 = vmatprep.subr.bf16.mxu1 %v2711_v59 }
 0x157   :  { %767 = vmatpush1.bf16.msra.mxu0 %v2222_v30  ;;  %1733 = vmatpush3.bf16.msra.mxu1 %v2265_v38 }
 0x158   :  { %768 = vmatprep.subr.bf16.mxu0 %v2225_v31  ;;  %1734 = vmatprep.subr.bf16.mxu1 %v2711_v59 }
 0x15b   :  { %769 = vmatpush1.bf16.msra.mxu0 %v2238_v34  ;;  %1735 = vmatpush3.bf16.msra.mxu1 %v2271_v39 }
 0x15c   :  { %863 = vmatprep.subr.bf16.mxu0 %v2135_v6  ;;  %1740 = vmatprep.subr.bf16.mxu1 %v2711_v59 }
 0x1fe   :  { %v679_v48 = vpop.f32.mrf.mxu0  ;;  %v720_v53 = vpop.f32.mrf.mxu1 }
 0x1ff   :  { %v680_v40 = vadd.f32 %v679_v48, %v2357_v61  ;;  %v721_v48 = vadd.f32 %v720_v53, %v2379_v63 }
 0x200   :  { %v681_v42 = vpop.f32.mrf.mxu0  ;;  %v1718_v0 = vpop.f32.mrf.mxu1 }
 0x201   :  { %v726_v56 = vadd.f32 %v680_v40, %v2314_v50  ;;  %v682_v49 = vadd.f32 %v681_v42, %v2365_v36 }
 0x202   :  { %v683_v4 = vpop.f32.mrf.mxu0  ;;  %v723_v47 = vpop.f32.mrf.mxu1 }
 0x203   :  { %v1550_v46 = vmul.f32 -1.442695, %v726_v56  ;;  %v733_v33 = vadd.f32 %v682_v49, %v2316_v52 }
 0x204   :  { %v684_v58 = vpop.f32.mrf.mxu0  ;;  %v1719_v1 = vpop.f32.mrf.mxu1 }
 0x205   :  { %1926 = vpow2.f32 %v1550_v46  ;;  %v1551_v45 = vmul.f32 -1.442695, %v733_v33 }
 0x207   :  { %1928 = vpow2.f32 %v1551_v45 }
 0x212   :  { %v1927_v16 = vpop.eup %1926 }
 0x213   :  { %v730_v54 = vadd.f32 1.0, %v1927_v16 }
 0x214   :  { %v1929_v20 = vpop.eup %1928 }
 0x215   :  { %1930 = vrcp.f32 %v730_v54  ;;  %v737_v41 = vadd.f32 1.0, %v1929_v20 }
 0x217   :  { %1932 = vrcp.f32 %v737_v41 }
 0x222   :  { %v1931_v50 = vpop.eup %1930 }
 0x223   :  { %v740_v40 = vmul.f32 %v1931_v50, %v721_v48 }
 0x224   :  { %v1933_v42 = vpop.eup %1932 }
 0x225   :  { %v741_v0 = vadd.f32 %v740_v40, %v2332_v2  ;;  %v743_v56 = vsub.f32 1.0, %v1933_v42  ;;  %v745_v52 = vmul.f32 %v1933_v42, %v2383_v24 }
 0x227   :  { %1934 = vtanh.f32 %v741_v0 }
 0x234   :  { %v1935_v4 = vpop.eup %1934 }
 0x235   :  { %v744_v47 = vmul.f32 %v1935_v4, %v743_v56 }
 0x237   :  { %v2429_v46 = vadd.f32 %v745_v52, %v744_v47 }
 0x239   :  { %v753_v49 = vpack.c.bf16 %v2429_v46, %v2429_v46 }
 0x23b   :  { %787 = vmatmul.mubr.bf16.vlgmr.msra.gmra.mxu0 %v753_v49  ;;  %1737 = vmatmul.mubr.bf16.vlgmr.msra.gmra.mxu1 %v753_v49 }
 0x23c   :  { %864 = vmatpush1.bf16.msra.mxu0 %v2137_v7  ;;  %1741 = vmatpush3.bf16.msra.mxu1 %v2186_v21 }
 0x23d   :  { %865 = vmatprep.subr.bf16.mxu0 %v2140_v8  ;;  %1742 = vmatprep.subr.bf16.mxu1 %v2711_v59 }
 0x23e   :  { %895 = vmatprep.mubr.bf16.mxu0 %v2712_v15  ;;  %1756 = vmatprep.mubr.msk.bf16.mxu1 %vm2072_vm1, %v2711_v59 }
 0x240   :  { %866 = vmatpush1.bf16.msra.mxu0 %v2149_v10  ;;  %1743 = vmatpush3.bf16.msra.mxu1 %v2202_v25 }
 0x241   :  { %867 = vmatprep.subr.bf16.mxu0 %v2152_v11  ;;  %1744 = vmatprep.subr.bf16.mxu1 %v2711_v59 }
 0x244   :  { %868 = vmatpush1.bf16.msra.mxu0 %v2160_v13  ;;  %1745 = vmatpush3.bf16.msra.mxu1 %v2215_v28 }
 0x245   :  { %869 = vmatprep.subr.bf16.mxu0 %v2163_v14  ;;  %1746 = vmatprep.subr.bf16.mxu1 %v2711_v59 }
 0x248   :  { %870 = vmatpush1.bf16.msra.mxu0 %v2177_v18  ;;  %1747 = vmatpush3.bf16.msra.mxu1 %v2231_v32 }
 0x249   :  { %871 = vmatprep.subr.bf16.mxu0 %v2180_v19  ;;  %1748 = vmatprep.subr.bf16.mxu1 %v2711_v59 }
 0x24c   :  { %872 = vmatpush1.bf16.msra.mxu0 %v2190_v22  ;;  %1749 = vmatpush3.bf16.msra.mxu1 %v2245_v35 }
 0x24d   :  { %873 = vmatprep.subr.bf16.mxu0 %v2193_v23  ;;  %1750 = vmatprep.subr.bf16.mxu1 %v2711_v59 }
 0x250   :  { %874 = vmatpush1.bf16.msra.mxu0 %v2206_v26  ;;  %1751 = vmatpush3.bf16.msra.mxu1 %v2255_v37 }
 0x251   :  { %875 = vmatprep.subr.bf16.mxu0 %v2209_v27  ;;  %1752 = vmatprep.subr.bf16.mxu1 %v2711_v59 }
 0x254   :  { %876 = vmatpush1.bf16.msra.mxu0 %v2222_v30  ;;  %1753 = vmatpush3.bf16.msra.mxu1 %v2265_v38 }
 0x255   :  { %877 = vmatprep.subr.bf16.mxu0 %v2225_v31  ;;  %1754 = vmatprep.subr.bf16.mxu1 %v2711_v59 }
 0x258   :  { %878 = vmatpush1.bf16.msra.mxu0 %v2238_v34  ;;  %1755 = vmatpush3.bf16.msra.mxu1 %v2271_v39 }
 0x259   :  { %972 = vmatprep.subr.bf16.mxu0 %v2135_v6  ;;  %1760 = vmatprep.subr.bf16.mxu1 %v2711_v59 }
 0x2fb   :  { %v788_v2 = vpop.f32.mrf.mxu0  ;;  %v829_v24 = vpop.f32.mrf.mxu1 }
 0x2fc   :  { %v789_v53 = vadd.f32 %v788_v2, %v2357_v61  ;;  %v830_v47 = vadd.f32 %v829_v24, %v2379_v63 }
 0x2fd   :  { %v790_v58 = vpop.f32.mrf.mxu0  ;;  %v1738_v1 = vpop.f32.mrf.mxu1 }
 0x2fe   :  { %v835_v33 = vadd.f32 %v789_v53, %v2319_v55  ;;  %v791_v20 = vadd.f32 %v790_v58, %v2365_v36 }
 0x2ff   :  { %v792_v45 = vpop.f32.mrf.mxu0  ;;  %v832_v16 = vpop.f32.mrf.mxu1 }
 0x300   :  { %v1552_v54 = vmul.f32 -1.442695, %v835_v33  ;;  %v842_v50 = vadd.f32 %v791_v20, %v2321_v57 }
 0x301   :  { %v793_v41 = vpop.f32.mrf.mxu0  ;;  %v1739_v48 = vpop.f32.mrf.mxu1 }
 0x302   :  { %1936 = vpow2.f32 %v1552_v54  ;;  %v1553_v40 = vmul.f32 -1.442695, %v842_v50 }
 0x304   :  { %1938 = vpow2.f32 %v1553_v40 }
 0x30f   :  { %v1937_v0 = vpop.eup %1936 }
 0x310   :  { %v839_v42 = vadd.f32 1.0, %v1937_v0 }
 0x311   :  { %v1939_v56 = vpop.eup %1938 }
 0x312   :  { %1940 = vrcp.f32 %v839_v42  ;;  %v846_v4 = vadd.f32 1.0, %v1939_v56 }
 0x314   :  { %1942 = vrcp.f32 %v846_v4 }
 0x31f   :  { %v1941_v55 = vpop.eup %1940 }
 0x320   :  { %v849_v52 = vmul.f32 %v1941_v55, %v830_v47 }
 0x321   :  { %v1943_v2 = vpop.eup %1942 }
 0x322   :  { %v850_v49 = vadd.f32 %v849_v52, %v2351_v51  ;;  %v852_v53 = vsub.f32 1.0, %v1943_v2  ;;  %v854_v57 = vmul.f32 %v1943_v2, %v2429_v46 }
 0x324   :  { %1944 = vtanh.f32 %v850_v49 }
 0x331   :  { %v1945_v58 = vpop.eup %1944 }
 0x332   :  { %v853_v1 = vmul.f32 %v1945_v58, %v852_v53 }
 0x334   :  { %v2475_v33 = vadd.f32 %v854_v57, %v853_v1 }
 0x336   :  { %v862_v45 = vpack.c.bf16 %v2475_v33, %v2475_v33 }
 0x338   :  { %896 = vmatmul.mubr.bf16.vlgmr.msra.gmra.mxu0 %v862_v45  ;;  %1757 = vmatmul.mubr.bf16.vlgmr.msra.gmra.mxu1 %v862_v45 }
 0x339   :  { %973 = vmatpush1.bf16.msra.mxu0 %v2137_v7  ;;  %1761 = vmatpush3.bf16.msra.mxu1 %v2186_v21 }
 0x33a   :  { %974 = vmatprep.subr.bf16.mxu0 %v2140_v8  ;;  %1762 = vmatprep.subr.bf16.mxu1 %v2711_v59 }
 0x33b   :  { %1004 = vmatprep.mubr.bf16.mxu0 %v2712_v15  ;;  %1776 = vmatprep.mubr.msk.bf16.mxu1 %vm2072_vm1, %v2711_v59 }
 0x33d   :  { %975 = vmatpush1.bf16.msra.mxu0 %v2149_v10  ;;  %1763 = vmatpush3.bf16.msra.mxu1 %v2202_v25 }
 0x33e   :  { %976 = vmatprep.subr.bf16.mxu0 %v2152_v11  ;;  %1764 = vmatprep.subr.bf16.mxu1 %v2711_v59 }
 0x341   :  { %977 = vmatpush1.bf16.msra.mxu0 %v2160_v13  ;;  %1765 = vmatpush3.bf16.msra.mxu1 %v2215_v28 }
 0x342   :  { %978 = vmatprep.subr.bf16.mxu0 %v2163_v14  ;;  %1766 = vmatprep.subr.bf16.mxu1 %v2711_v59 }
 0x345   :  { %979 = vmatpush1.bf16.msra.mxu0 %v2177_v18  ;;  %1767 = vmatpush3.bf16.msra.mxu1 %v2231_v32 }
 0x346   :  { %980 = vmatprep.subr.bf16.mxu0 %v2180_v19  ;;  %1768 = vmatprep.subr.bf16.mxu1 %v2711_v59 }
 0x349   :  { %981 = vmatpush1.bf16.msra.mxu0 %v2190_v22  ;;  %1769 = vmatpush3.bf16.msra.mxu1 %v2245_v35 }
 0x34a   :  { %982 = vmatprep.subr.bf16.mxu0 %v2193_v23  ;;  %1770 = vmatprep.subr.bf16.mxu1 %v2711_v59 }
 0x34d   :  { %983 = vmatpush1.bf16.msra.mxu0 %v2206_v26  ;;  %1771 = vmatpush3.bf16.msra.mxu1 %v2255_v37 }
 0x34e   :  { %984 = vmatprep.subr.bf16.mxu0 %v2209_v27  ;;  %1772 = vmatprep.subr.bf16.mxu1 %v2711_v59 }
 0x351   :  { %985 = vmatpush1.bf16.msra.mxu0 %v2222_v30  ;;  %1773 = vmatpush3.bf16.msra.mxu1 %v2265_v38 }
 0x352   :  { %986 = vmatprep.subr.bf16.mxu0 %v2225_v31  ;;  %1774 = vmatprep.subr.bf16.mxu1 %v2711_v59 }
 0x355   :  { %987 = vmatpush1.bf16.msra.mxu0 %v2238_v34  ;;  %1775 = vmatpush3.bf16.msra.mxu1 %v2271_v39 }
 0x356   :  { %1081 = vmatprep.subr.bf16.mxu0 %v2135_v6  ;;  %1780 = vmatprep.subr.bf16.mxu1 %v2711_v59 }
 0x3f8   :  { %v897_v51 = vpop.f32.mrf.mxu0  ;;  %v938_v46 = vpop.f32.mrf.mxu1 }
 0x3f9   :  { %v898_v24 = vadd.f32 %v897_v51, %v2357_v61  ;;  %v939_v2 = vadd.f32 %v938_v46, %v2379_v63 }
 0x3fa   :  { %v899_v16 = vpop.f32.mrf.mxu0  ;;  %v1758_v54 = vpop.f32.mrf.mxu1 }
 0x3fb   :  { %v944_v20 = vadd.f32 %v898_v24, %v2327_v60  ;;  %v900_v40 = vadd.f32 %v899_v16, %v2365_v36 }
 0x3fc   :  { %v901_v41 = vpop.f32.mrf.mxu0  ;;  %v941_v48 = vpop.f32.mrf.mxu1 }
 0x3fd   :  { %v1554_v50 = vmul.f32 -1.442695, %v944_v20  ;;  %v951_v56 = vadd.f32 %v900_v40, %v2329_v62 }
 0x3fe   :  { %v902_v0 = vpop.f32.mrf.mxu0  ;;  %v1759_v42 = vpop.f32.mrf.mxu1 }
 0x3ff   :  { %1946 = vpow2.f32 %v1554_v50  ;;  %v1555_v4 = vmul.f32 -1.442695, %v951_v56 }
 0x401   :  { %1948 = vpow2.f32 %v1555_v4 }
 0x40c   :  { %v1947_v47 = vpop.eup %1946 }
 0x40d   :  { %v948_v55 = vadd.f32 1.0, %v1947_v47 }
 0x40e   :  { %v1949_v52 = vpop.eup %1948 }
 0x40f   :  { %1950 = vrcp.f32 %v948_v55  ;;  %v955_v49 = vadd.f32 1.0, %v1949_v52 }
 0x411   :  { %1952 = vrcp.f32 %v955_v49 }
 0x41c   :  { %v1951_v60 = vpop.eup %1950 }
 0x41d   :  { %v958_v53 = vmul.f32 %v1951_v60, %v939_v2  ;;  %v2571_v60 = vld [vmem:[#allocation3 + $0xa8] ss:$12 sps:$4 sm:$0xff]  }
 0x41e   :  { %v1953_v1 = vpop.eup %1952 }
 0x41f   :  { %v959_v58 = vadd.f32 %v958_v53, %v2343_v29  ;;  %v961_v57 = vsub.f32 1.0, %v1953_v1  ;;  %v963_v62 = vmul.f32 %v1953_v1, %v2475_v33  ;;  %v2582_v53 = vld [vmem:[#allocation3 + $0x90] ss:$12 sps:$4 sm:$0xff]  }
 0x420   :  { %v2594_v1 = vld [vmem:[#allocation3 + $0x64] ss:$12 sps:$4 sm:$0xff]  }
 0x421   :  { %1954 = vtanh.f32 %v959_v58  ;;  %v2586_v58 = vld [vmem:[#allocation3 + $0x7c] ss:$12 sps:$4 sm:$0xff]  }
 0x42e   :  { %v1955_v45 = vpop.eup %1954 }
 0x42f   :  { %v962_v51 = vmul.f32 %v1955_v45, %v961_v57  ;;  %v2598_v57 = vld [vmem:[#allocation3 + $0x60] ss:$12 sps:$4 sm:$0xff]  }
 0x431   :  { %v2521_v24 = vadd.f32 %v963_v62, %v962_v51 }
 0x433   :  { %v971_v16 = vpack.c.bf16 %v2521_v24, %v2521_v24 }
 0x435   :  { %1005 = vmatmul.mubr.bf16.vlgmr.msra.gmra.mxu0 %v971_v16  ;;  %1777 = vmatmul.mubr.bf16.vlgmr.msra.gmra.mxu1 %v971_v16 }
 0x436   :  { %1082 = vmatpush1.bf16.msra.mxu0 %v2137_v7  ;;  %1781 = vmatpush3.bf16.msra.mxu1 %v2186_v21 }
 0x437   :  { %1083 = vmatprep.subr.bf16.mxu0 %v2140_v8  ;;  %1782 = vmatprep.subr.bf16.mxu1 %v2711_v59 }
 0x438   :  { %1113 = vmatprep.mubr.bf16.mxu0 %v2712_v15  ;;  %1796 = vmatprep.mubr.msk.bf16.mxu1 %vm2072_vm1, %v2711_v59 }
 0x43a   :  { %1084 = vmatpush1.bf16.msra.mxu0 %v2149_v10  ;;  %1783 = vmatpush3.bf16.msra.mxu1 %v2202_v25 }
 0x43b   :  { %1085 = vmatprep.subr.bf16.mxu0 %v2152_v11  ;;  %1784 = vmatprep.subr.bf16.mxu1 %v2711_v59 }
 0x43e   :  { %1086 = vmatpush1.bf16.msra.mxu0 %v2160_v13  ;;  %1785 = vmatpush3.bf16.msra.mxu1 %v2215_v28 }
 0x43f   :  { %1087 = vmatprep.subr.bf16.mxu0 %v2163_v14  ;;  %1786 = vmatprep.subr.bf16.mxu1 %v2711_v59 }
 0x442   :  { %1088 = vmatpush1.bf16.msra.mxu0 %v2177_v18  ;;  %1787 = vmatpush3.bf16.msra.mxu1 %v2231_v32 }
 0x443   :  { %1089 = vmatprep.subr.bf16.mxu0 %v2180_v19  ;;  %1788 = vmatprep.subr.bf16.mxu1 %v2711_v59 }
 0x446   :  { %1090 = vmatpush1.bf16.msra.mxu0 %v2190_v22  ;;  %1789 = vmatpush3.bf16.msra.mxu1 %v2245_v35 }
 0x447   :  { %1091 = vmatprep.subr.bf16.mxu0 %v2193_v23  ;;  %1790 = vmatprep.subr.bf16.mxu1 %v2711_v59 }
 0x44a   :  { %1092 = vmatpush1.bf16.msra.mxu0 %v2206_v26  ;;  %1791 = vmatpush3.bf16.msra.mxu1 %v2255_v37 }
 0x44b   :  { %1093 = vmatprep.subr.bf16.mxu0 %v2209_v27  ;;  %1792 = vmatprep.subr.bf16.mxu1 %v2711_v59 }
 0x44e   :  { %1094 = vmatpush1.bf16.msra.mxu0 %v2222_v30  ;;  %1793 = vmatpush3.bf16.msra.mxu1 %v2265_v38 }
 0x44f   :  { %1095 = vmatprep.subr.bf16.mxu0 %v2225_v31  ;;  %1794 = vmatprep.subr.bf16.mxu1 %v2711_v59 }
 0x452   :  { %1096 = vmatpush1.bf16.msra.mxu0 %v2238_v34  ;;  %1795 = vmatpush3.bf16.msra.mxu1 %v2271_v39 }
 0x453   :  { %1190 = vmatprep.subr.bf16.mxu0 %v2135_v6  ;;  %1800 = vmatprep.subr.bf16.mxu1 %v2711_v59 }
 0x4f5   :  { %v1006_v7 = vpop.f32.mrf.mxu0  ;;  %v1047_v8 = vpop.f32.mrf.mxu1 }
 0x4f6   :  { %v1007_v10 = vadd.f32 %v1006_v7, %v2357_v61  ;;  %v1048_v0 = vadd.f32 %v1047_v8, %v2379_v63 }
 0x4f7   :  { %v1008_v11 = vpop.f32.mrf.mxu0  ;;  %v1778_v13 = vpop.f32.mrf.mxu1 }
 0x4f8   :  { %v1053_v14 = vadd.f32 %v1007_v10, %v2334_v3  ;;  %v1009_v33 = vadd.f32 %v1008_v11, %v2365_v36 }
 0x4f9   :  { %v1010_v18 = vpop.f32.mrf.mxu0  ;;  %v1050_v19 = vpop.f32.mrf.mxu1 }
 0x4fa   :  { %v1556_v29 = vmul.f32 -1.442695, %v1053_v14  ;;  %v1060_v6 = vadd.f32 %v1009_v33, %v2336_v5 }
 0x4fb   :  { %v1011_v46 = vpop.f32.mrf.mxu0  ;;  %v1779_v54 = vpop.f32.mrf.mxu1 }
 0x4fc   :  { %1956 = vpow2.f32 %v1556_v29  ;;  %v1557_v20 = vmul.f32 -1.442695, %v1060_v6  ;;  %v2005_v46 = vld [vmem:[#allocation3 + $0xb0] ss:$12 sps:$4 sm:$0xff]   ;;  %v2007_v54 = vld [vmem:[#allocation3 + $0x80] ss:$12 sps:$4 sm:$0xff]  }
 0x4fd   :  { %v2009_v6 = vld [vmem:[#allocation3 + $0x48] ss:$12 sps:$4 sm:$0xff]  }
 0x4fe   :  { %1958 = vpow2.f32 %v1557_v20  ;;  %v2010_v20 = vld [vmem:[#allocation3 + $0x50] ss:$12 sps:$4 sm:$0xff]  }
 0x509   :  { %v1957_v41 = vpop.eup %1956 }
 0x50a   :  { %v1057_v48 = vadd.f32 1.0, %v1957_v41  ;;  %v2011_v41 = vld [vmem:[#allocation3 + $0x34] ss:$12 sps:$4 sm:$0xff]  }
 0x50b   :  { %v1959_v50 = vpop.eup %1958 }
 0x50c   :  { %1960 = vrcp.f32 %v1057_v48  ;;  %v1064_v40 = vadd.f32 1.0, %v1959_v50  ;;  %v2012_v48 = vld [vmem:[#allocation3 + $0x30] ss:$12 sps:$4 sm:$0xff]   ;;  %v2013_v50 = vld [vmem:[#allocation3 + $0x38] ss:$12 sps:$4 sm:$0xff]  }
 0x50e   :  { %1962 = vrcp.f32 %v1064_v40  ;;  %v2014_v40 = vld [vmem:[#allocation3 + $0x1c] ss:$12 sps:$4 sm:$0xff]  }
 0x519   :  { %v1961_v3 = vpop.eup %1960 }
 0x51a   :  { %v1067_v42 = vmul.f32 %v1961_v3, %v1048_v0  ;;  %v2015_v0 = vld [vmem:[#allocation3 + $0x18] ss:$12 sps:$4 sm:$0xff]   ;;  %v2016_v3 = vld [vmem:[#allocation3 + $0x20] ss:$12 sps:$4 sm:$0xff]  }
 0x51b   :  { %v1963_v4 = vpop.eup %1962 }
 0x51c   :  { %v1068_v56 = vadd.f32 %v1067_v42, %v2368_v43  ;;  %v1070_v47 = vsub.f32 1.0, %v1963_v4  ;;  %v1072_v5 = vmul.f32 %v1963_v4, %v2521_v24  ;;  %v2575_v43 = vld [vmem:[#allocation3 + $0x94] ss:$12 sps:$4 sm:$0xff]   ;;  %v2017_v42 = vld [vmem:[#allocation3 + $0x4] ss:$12 sps:$4 sm:$0xff]  }
 0x51d   :  { %v2019_v4 = vld [vmem:[#allocation3 + $0x8] ss:$12 sps:$4 sm:$0xff]  }
 0x51e   :  { %1964 = vtanh.f32 %v1068_v56  ;;  %v2018_v56 = vld [vmem:[#allocation3] ss:$12 sps:$4 sm:$0xff]  }
 0x52b   :  { %v1965_v55 = vpop.eup %1964 }
 0x52c   :  { %v1071_v52 = vmul.f32 %v1965_v55, %v1070_v47 }
 0x52e   :  { %v2567_v49 = vadd.f32 %v1072_v5, %v1071_v52 }
 0x530   :  { %v1080_v2 = vpack.c.bf16 %v2567_v49, %v2567_v49 }
 0x532   :  { %1114 = vmatmul.mubr.bf16.vlgmr.msra.gmra.mxu0 %v1080_v2  ;;  %1797 = vmatmul.mubr.bf16.vlgmr.msra.gmra.mxu1 %v1080_v2  ;;  %v2713_v2 = vld [vmem:[#allocation9_spill] sm:$0xff] }
 0x533   :  { %1191 = vmatpush1.bf16.msra.mxu0 %v2571_v60  ;;  %1801 = vmatpush3.bf16.msra.mxu1 %v2186_v21  ;;  %v2590_v21 = vld [vmem:[#allocation3 + $0x78] ss:$12 sps:$4 sm:$0xff]  }
 0x534   :  { %1192 = vmatprep.subr.bf16.mxu0 %v2575_v43  ;;  %1802 = vmatprep.subr.bf16.mxu1 %v2711_v59 }
 0x535   :  { %1222 = vmatprep.mubr.bf16.mxu0 %v2712_v15  ;;  %1816 = vmatprep.mubr.msk.bf16.mxu1 %vm2072_vm1, %v2711_v59 }
 0x537   :  { %1193 = vmatpush1.bf16.msra.mxu0 %v2582_v53  ;;  %1803 = vmatpush3.bf16.msra.mxu1 %v2202_v25  ;;  %v2602_v25 = vld [vmem:[#allocation3 + $0x4c] ss:$12 sps:$4 sm:$0xff]  }
 0x538   :  { %1194 = vmatprep.subr.bf16.mxu0 %v2586_v58  ;;  %1804 = vmatprep.subr.bf16.mxu1 %v2711_v59 }
 0x53b   :  { %1195 = vmatpush1.bf16.msra.mxu0 %v2590_v21  ;;  %1805 = vmatpush3.bf16.msra.mxu1 %v2215_v28 }
 0x53c   :  { %1196 = vmatprep.subr.bf16.mxu0 %v2594_v1  ;;  %1806 = vmatprep.subr.bf16.mxu1 %v2711_v59 }
 0x53f   :  { %1197 = vmatpush1.bf16.msra.mxu0 %v2598_v57  ;;  %1807 = vmatpush3.bf16.msra.mxu1 %v2231_v32 }
 0x540   :  { %1198 = vmatprep.subr.bf16.mxu0 %v2602_v25  ;;  %1808 = vmatprep.subr.bf16.mxu1 %v2711_v59 }
 0x543   :  { %1199 = vmatpush1.bf16.msra.mxu0 %v2190_v22  ;;  %1809 = vmatpush3.bf16.msra.mxu1 %v2245_v35  ;;  %v2004_v22 = vld [vmem:[#allocation3 + $0xac] ss:$12 sps:$4 sm:$0xff]  }
 0x544   :  { %1200 = vmatprep.subr.bf16.mxu0 %v2193_v23  ;;  %1810 = vmatprep.subr.bf16.mxu1 %v2711_v59 }
 0x547   :  { %1201 = vmatpush1.bf16.msra.mxu0 %v2206_v26  ;;  %1811 = vmatpush3.bf16.msra.mxu1 %v2255_v37 }
 0x548   :  { %1202 = vmatprep.subr.bf16.mxu0 %v2209_v27  ;;  %1812 = vmatprep.subr.bf16.mxu1 %v2711_v59 }
 0x54b   :  { %1203 = vmatpush1.bf16.msra.mxu0 %v2222_v30  ;;  %1813 = vmatpush3.bf16.msra.mxu1 %v2265_v38 }
 0x54c   :  { %1204 = vmatprep.subr.bf16.mxu0 %v2225_v31  ;;  %1814 = vmatprep.subr.bf16.mxu1 %v2711_v59 }
 0x54f   :  { %1205 = vmatpush1.bf16.msra.mxu0 %v2238_v34  ;;  %1815 = vmatpush3.bf16.msra.mxu1 %v2271_v39 }
 0x550   :  { %1299 = vmatprep.subr.bf16.mxu0 %v2004_v22  ;;  %1820 = vmatprep.subr.bf16.mxu1 %v2711_v59 }
 0x5f2   :  { %v1115_v23 = vpop.f32.mrf.mxu0  ;;  %v1156_v26 = vpop.f32.mrf.mxu1 }
 0x5f3   :  { %v1116_v27 = vadd.f32 %v1115_v23, %v2357_v61  ;;  %v1157_v8 = vadd.f32 %v1156_v26, %v2379_v63 }
 0x5f4   :  { %v1117_v28 = vpop.f32.mrf.mxu0  ;;  %v1798_v30 = vpop.f32.mrf.mxu1 }
 0x5f5   :  { %v1162_v32 = vadd.f32 %v1116_v27, %v2338_v12  ;;  %v1118_v38 = vadd.f32 %v1117_v28, %v2365_v36 }
 0x5f6   :  { %v1119_v35 = vpop.f32.mrf.mxu0  ;;  %v1159_v31 = vpop.f32.mrf.mxu1 }
 0x5f7   :  { %v1558_v37 = vmul.f32 -1.442695, %v1162_v32  ;;  %v1169_v39 = vadd.f32 %v1118_v38, %v2340_v17 }
 0x5f8   :  { %v1120_v34 = vpop.f32.mrf.mxu0  ;;  %v1799_v45 = vpop.f32.mrf.mxu1 }
 0x5f9   :  { %1966 = vpow2.f32 %v1558_v37  ;;  %v1559_v51 = vmul.f32 -1.442695, %v1169_v39 }
 0x5fb   :  { %1968 = vpow2.f32 %v1559_v51 }
 0x606   :  { %v1967_v62 = vpop.eup %1966 }
 0x607   :  { %v1166_v24 = vadd.f32 1.0, %v1967_v62 }
 0x608   :  { %v1969_v16 = vpop.eup %1968 }
 0x609   :  { %1970 = vrcp.f32 %v1166_v24  ;;  %v1173_v7 = vadd.f32 1.0, %v1969_v16  ;;  %v1416_v16 = vld [vmem:[#allocation5 + $0x78] sm:$0xff] }
 0x60b   :  { %1972 = vrcp.f32 %v1173_v7  ;;  %v1414_v7 = vld [vmem:[#allocation5 + $0x68] sm:$0xff] }
 0x616   :  { %v1971_v12 = vpop.eup %1970 }
 0x617   :  { %v1176_v10 = vmul.f32 %v1971_v12, %v1157_v8  ;;  %v1413_v8 = vld [vmem:[#allocation5 + $0x60] sm:$0xff]  ;;  %v1412_v12 = vld [vmem:[#allocation5 + $0x58] sm:$0xff] }
 0x618   :  { %v1973_v13 = vpop.eup %1972 }
 0x619   :  { %v1177_v11 = vadd.f32 %v1176_v10, %v2362_v9  ;;  %v1179_v14 = vsub.f32 1.0, %v1973_v13  ;;  %v1181_v17 = vmul.f32 %v1973_v13, %v2567_v49  ;;  %v2006_v9 = vld [vmem:[#allocation3 + $0x98] ss:$12 sps:$4 sm:$0xff]   ;;  %v1411_v10 = vld [vmem:[#allocation5 + $0x50] sm:$0xff] }
 0x61a   :  { %v1409_v13 = vld [vmem:[#allocation5 + $0x40] sm:$0xff] }
 0x61b   :  { %1974 = vtanh.f32 %v1177_v11  ;;  %v1410_v11 = vld [vmem:[#allocation5 + $0x48] sm:$0xff] }
 0x628   :  { %v1975_v18 = vpop.eup %1974 }
 0x629   :  { %v1180_v19 = vmul.f32 %v1975_v18, %v1179_v14  ;;  %v1408_v14 = vld [vmem:[#allocation5 + $0x38] sm:$0xff]  ;;  %v1407_v18 = vld [vmem:[#allocation5 + $0x30] sm:$0xff] }
 0x62b   :  { %v2628_v29 = vadd.f32 %v1181_v17, %v1180_v19  ;;  %v1406_v19 = vld [vmem:[#allocation5 + $0x28] sm:$0xff]  ;;  %v1405_v17 = vld [vmem:[#allocation5 + $0x20] sm:$0xff] }
 0x62d   :  { %v1189_v33 = vpack.c.bf16 %v2628_v29, %v2628_v29 }
 0x62f   :  { %1223 = vmatmul.mubr.bf16.vlgmr.msra.gmra.mxu0 %v1189_v33  ;;  %1817 = vmatmul.mubr.bf16.vlgmr.msra.gmra.mxu1 %v1189_v33  ;;  %v1403_v33 = vld [vmem:[#allocation5 + $0x10] sm:$0xff] }
 0x630   :  { %1300 = vmatpush1.bf16.msra.mxu0 %v2571_v60  ;;  %1821 = vmatpush3.bf16.msra.mxu1 %v2005_v46  ;;  %v1402_v46 = vld [vmem:[#allocation5 + $0x8] sm:$0xff] }
 0x631   :  { %1301 = vmatprep.subr.bf16.mxu0 %v2575_v43  ;;  %1822 = vmatprep.subr.bf16.mxu1 %v2711_v59 }
 0x632   :  { %1331 = vmatprep.mubr.bf16.mxu0 %v2712_v15  ;;  %1836 = vmatprep.mubr.msk.bf16.mxu1 %vm2072_vm1, %v2711_v59  ;;  %v2008_v15 = vld [vmem:[#allocation3 + $0x68] ss:$12 sps:$4 sm:$0xff]  }
 0x634   :  { %1302 = vmatpush1.bf16.msra.mxu0 %v2582_v53  ;;  %1823 = vmatpush3.bf16.msra.mxu1 %v2006_v9  ;;  %v1401_v9 = vld [vmem:[#allocation5] sm:$0xff] }
 0x635   :  { %1303 = vmatprep.subr.bf16.mxu0 %v2586_v58  ;;  %1824 = vmatprep.subr.bf16.mxu1 %v2711_v59 }
 0x638   :  { %1304 = vmatpush1.bf16.msra.mxu0 %v2590_v21  ;;  %1825 = vmatpush3.bf16.msra.mxu1 %v2007_v54 }
 0x639   :  { %1305 = vmatprep.subr.bf16.mxu0 %v2594_v1  ;;  %1826 = vmatprep.subr.bf16.mxu1 %v2711_v59 }
 0x63c   :  { %1306 = vmatpush1.bf16.msra.mxu0 %v2598_v57  ;;  %1827 = vmatpush3.bf16.msra.mxu1 %v2008_v15 }
 0x63d   :  { %1307 = vmatprep.subr.bf16.mxu0 %v2602_v25  ;;  %1828 = vmatprep.subr.bf16.mxu1 %v2711_v59  ;;  %v2714_v25 = vld [vmem:[#allocation10_spill] sm:$0xff] }
 0x640   :  { %1308 = vmatpush1.bf16.msra.mxu0 %v2009_v6  ;;  %1829 = vmatpush3.bf16.msra.mxu1 %v2010_v20 }
 0x641   :  { %1309 = vmatprep.subr.bf16.mxu0 %v2011_v41  ;;  %1830 = vmatprep.subr.bf16.mxu1 %v2711_v59 }
 0x644   :  { %1310 = vmatpush1.bf16.msra.mxu0 %v2012_v48  ;;  %1831 = vmatpush3.bf16.msra.mxu1 %v2013_v50  ;;  %v2715_v48 = vld [vmem:[#allocation11_spill] sm:$0xff] }
 0x645   :  { %1311 = vmatprep.subr.bf16.mxu0 %v2014_v40  ;;  %1832 = vmatprep.subr.bf16.mxu1 %v2711_v59 }
 0x648   :  { %1312 = vmatpush1.bf16.msra.mxu0 %v2015_v0  ;;  %1833 = vmatpush3.bf16.msra.mxu1 %v2016_v3 }
 0x649   :  { %1313 = vmatprep.subr.bf16.mxu0 %v2017_v42  ;;  %1834 = vmatprep.subr.bf16.mxu1 %v2711_v59 }
 0x64c   :  { %1314 = vmatpush1.bf16.msra.mxu0 %v2018_v56  ;;  %1835 = vmatpush3.bf16.msra.mxu1 %v2019_v4 }
 0x64d   :  { %1840 = vmatprep.subr.mxu0 %v2711_v59 }
 0x6ef   :  { %v1224_v47 = vpop.f32.mrf.mxu0  ;;  %v1265_v55 = vpop.f32.mrf.mxu1 }
 0x6f0   :  { %v1225_v52 = vadd.f32 %v1224_v47, %v2357_v61  ;;  %v1266_v32 = vadd.f32 %v1265_v55, %v2379_v63  ;;  %v2716_v47 = vld [vmem:[#allocation12_spill] sm:$0xff] }
 0x6f1   :  { %v1226_v5 = vpop.f32.mrf.mxu0  ;;  %v1818_v49 = vpop.f32.mrf.mxu1 }
 0x6f2   :  { %v1271_v60 = vadd.f32 %v1225_v52, %v2713_v2  ;;  %v1227_v21 = vadd.f32 %v1226_v5, %v2365_v36 }
 0x6f3   :  { %v1228_v43 = vpop.f32.mrf.mxu0  ;;  %v1268_v53 = vpop.f32.mrf.mxu1 }
 0x6f4   :  { %v1560_v58 = vmul.f32 -1.442695, %v1271_v60  ;;  %v1278_v22 = vadd.f32 %v1227_v21, %v2714_v25  ;;  %v2717_v53 = vld [vmem:[#allocation13_spill] sm:$0xff] }
 0x6f5   :  { %v1229_v1 = vpop.f32.mrf.mxu0  ;;  %v1819_v57 = vpop.f32.mrf.mxu1 }
 0x6f6   :  { %1976 = vpow2.f32 %v1560_v58  ;;  %v1561_v23 = vmul.f32 -1.442695, %v1278_v22 }
 0x6f8   :  { %1978 = vpow2.f32 %v1561_v23  ;;  %v1564_v23 = vld [vmem:[%s2698_s6] ss:$0 sm:$0xff] }
 0x703   :  { %v1977_v26 = vpop.eup %1976 }
 0x704   :  { %v1275_v27 = vadd.f32 1.0, %v1977_v26 }
 0x705   :  { %v1979_v28 = vpop.eup %1978 }
 0x706   :  { %1980 = vrcp.f32 %v1275_v27  ;;  %v1282_v30 = vadd.f32 1.0, %v1979_v28 }
 0x708   :  { %1982 = vrcp.f32 %v1282_v30 }
 0x713   :  { %v1981_v35 = vpop.eup %1980 }
 0x714   :  { %v1285_v31 = vmul.f32 %v1981_v35, %v1266_v32 }
 0x715   :  { %v1983_v38 = vpop.eup %1982 }
 0x716   :  { %v1286_v37 = vadd.f32 %v1285_v31, %v2375_v44  ;;  %v1288_v34 = vsub.f32 1.0, %v1983_v38  ;;  %v1290_v51 = vmul.f32 %v1983_v38, %v2628_v29  ;;  %v1415_v44 = vld [vmem:[#allocation5 + $0x70] sm:$0xff]  ;;  %v1404_v29 = vld [vmem:[#allocation5 + $0x18] sm:$0xff] }
 0x718   :  { %1984 = vtanh.f32 %v1286_v37 }
 0x725   :  { %v1985_v45 = vpop.eup %1984 }
 0x726   :  { %v1289_v39 = vmul.f32 %v1985_v45, %v1288_v34 }
 0x728   :  { %v2658_v62 = vadd.f32 %v1290_v51, %v1289_v39 }
 0x72a   :  { %v1298_v24 = vpack.c.bf16 %v2658_v62, %v2658_v62 }
 0x72c   :  { %1332 = vmatmul.mubr.bf16.vlgmr.msra.gmra.mxu0 %v1298_v24  ;;  %1837 = vmatmul.mubr.bf16.vlgmr.msra.gmra.mxu1 %v1298_v24 }
 0x72d   :  { %1872 = vmatprep.mubr.msk.f32.mxu0 %vm2072_vm1, %v2711_v59  ;;  %1841 = vmatpush3.msra.mxu0 %v1416_v16 }
 0x72e   :  { %1842 = vmatprep.subr.mxu0 %v2711_v59 }
 0x72f   :  { %1843 = vmatpush3.msra.mxu0 %v1415_v44 }
 0x730   :  { %1844 = vmatprep.subr.mxu0 %v2711_v59 }
 0x731   :  { %1845 = vmatpush3.msra.mxu0 %v1414_v7 }
 0x732   :  { %1846 = vmatprep.subr.mxu0 %v2711_v59 }
 0x733   :  { %1847 = vmatpush3.msra.mxu0 %v1413_v8 }
 0x734   :  { %1848 = vmatprep.subr.mxu0 %v2711_v59 }
 0x735   :  { %1849 = vmatpush3.msra.mxu0 %v1412_v12 }
 0x736   :  { %1850 = vmatprep.subr.mxu0 %v2711_v59 }
 0x737   :  { %1851 = vmatpush3.msra.mxu0 %v1411_v10 }
 0x738   :  { %1852 = vmatprep.subr.mxu0 %v2711_v59 }
 0x739   :  { %1853 = vmatpush3.msra.mxu0 %v1410_v11 }
 0x73a   :  { %1854 = vmatprep.subr.mxu0 %v2711_v59 }
 0x73b   :  { %1855 = vmatpush3.msra.mxu0 %v1409_v13 }
 0x73c   :  { %1856 = vmatprep.subr.mxu0 %v2711_v59 }
 0x73d   :  { %1857 = vmatpush3.msra.mxu0 %v1408_v14 }
 0x73e   :  { %1858 = vmatprep.subr.mxu0 %v2711_v59 }
 0x73f   :  { %1859 = vmatpush3.msra.mxu0 %v1407_v18 }
 0x740   :  { %1860 = vmatprep.subr.mxu0 %v2711_v59 }
 0x741   :  { %1861 = vmatpush3.msra.mxu0 %v1406_v19 }
 0x742   :  { %1862 = vmatprep.subr.mxu0 %v2711_v59 }
 0x743   :  { %1863 = vmatpush3.msra.mxu0 %v1405_v17 }
 0x744   :  { %1864 = vmatprep.subr.mxu0 %v2711_v59 }
 0x745   :  { %1865 = vmatpush3.msra.mxu0 %v1404_v29 }
 0x746   :  { %1866 = vmatprep.subr.mxu0 %v2711_v59 }
 0x747   :  { %1867 = vmatpush3.msra.mxu0 %v1403_v33 }
 0x748   :  { %1868 = vmatprep.subr.mxu0 %v2711_v59 }
 0x749   :  { %1869 = vmatpush3.msra.mxu0 %v1402_v46 }
 0x74a   :  { %1870 = vmatprep.subr.mxu0 %v2711_v59 }
 0x74b   :  { %1871 = vmatpush3.msra.mxu0 %v1401_v9 }
 0x7ec   :  { %v1333_v54 = vpop.f32.mrf.mxu0  ;;  %v1374_v15 = vpop.f32.mrf.mxu1 }
 0x7ed   :  { %v1334_v6 = vadd.f32 %v1333_v54, %v2357_v61  ;;  %v1375_v2 = vadd.f32 %v1374_v15, %v2379_v63 }
 0x7ee   :  { %v1335_v20 = vpop.f32.mrf.mxu0  ;;  %v1838_v41 = vpop.f32.mrf.mxu1 }
 0x7ef   :  { %v1380_v50 = vadd.f32 %v1334_v6, %v2715_v48  ;;  %v1336_v42 = vadd.f32 %v1335_v20, %v2365_v36 }
 0x7f0   :  { %v1337_v40 = vpop.f32.mrf.mxu0  ;;  %v1377_v0 = vpop.f32.mrf.mxu1 }
 0x7f1   :  { %v1562_v3 = vmul.f32 -1.442695, %v1380_v50  ;;  %v1387_v55 = vadd.f32 %v1336_v42, %v2716_v47 }
 0x7f2   :  { %v1338_v56 = vpop.f32.mrf.mxu0  ;;  %v1839_v4 = vpop.f32.mrf.mxu1 }
 0x7f3   :  { %1986 = vpow2.f32 %v1562_v3  ;;  %v1563_v59 = vmul.f32 -1.442695, %v1387_v55 }
 0x7f5   :  { %1988 = vpow2.f32 %v1563_v59 }
 0x800   :  { %v1987_v52 = vpop.eup %1986 }
 0x801   :  { %v1384_v5 = vadd.f32 1.0, %v1987_v52 }
 0x802   :  { %v1989_v61 = vpop.eup %1988 }
 0x803   :  { %1990 = vrcp.f32 %v1384_v5  ;;  %v1391_v49 = vadd.f32 1.0, %v1989_v61 }
 0x805   :  { %1992 = vrcp.f32 %v1391_v49 }
 0x810   :  { %v1991_v60 = vpop.eup %1990 }
 0x811   :  { %v1394_v43 = vmul.f32 %v1991_v60, %v1375_v2 }
 0x812   :  { %v1993_v36 = vpop.eup %1992 }
 0x813   :  { %v1395_v58 = vadd.f32 %v1394_v43, %v2717_v53  ;;  %v1397_v21 = vsub.f32 1.0, %v1993_v36  ;;  %v1399_v25 = vmul.f32 %v1993_v36, %v2658_v62 }
 0x815   :  { %1994 = vtanh.f32 %v1395_v58 }
 0x822   :  { %v1995_v1 = vpop.eup %1994 }
 0x823   :  { %v1398_v57 = vmul.f32 %v1995_v1, %v1397_v21 }
 0x825   :  { %v1400_v22 = vadd.f32 %v1399_v25, %v1398_v57 }
 0x827   :  { %1873 = vmatmul.mubr.f32.vlgmr.msra.gmra.mxu0 %v1400_v22 }
 0x8e7   :  { %v1490_v26 = vpop.f32.mrf.mxu0 }
 0x8e8   :  { %v1491_v63 = vadd.f32 %v1564_v23, %v1490_v26 }
 0x8e9   :  { %v1874_v27 = vpop.f32.mrf.mxu0 }
 0x8ea   :  { %1494 = vst [vmem:[%s2699_s7] sm:$0xff] %v1491_v63 }
 0x8eb   :  { %1499 = vsyncpa [#allocation4], 1 }
 0x8ec   :  { %1500 = vsyncpa [#allocation6], 1 }

</bundles_post_ra>
